<compile_context>
chip_gen: v7x
topology: tpu7x:2x2x1
jax: 0.10.0
libtpu: 0.0.40
codegen_flags: <defaults>
</compile_context>

<pallas_src>
import functools
import math

import jax
import jax.numpy as jnp
import numpy as np
from jax.experimental import pallas as pl
from jax.experimental.pallas import tpu as pltpu


# ---------------------------------------------------------------------------
# small helpers
# ---------------------------------------------------------------------------

def _nbytes(shape, dtype):
    return math.prod(shape) * jnp.dtype(dtype).itemsize


def _pad_rows(a, multiple=8):
    m = a.shape[0]
    m_pad = -(-m // multiple) * multiple
    if m_pad != m:
        a = jnp.pad(a, ((0, m_pad - m), (0, 0)))
    return a


def _pick_row_tile(m_pad, max_tile=256):
    tile = min(max_tile, m_pad)           # m_pad is a multiple of 8
    while m_pad % tile:
        tile -= 8
    return tile


def _vmem_limit(footprint_bytes):
    return int(min(max(2 * footprint_bytes, 8 << 20), 64 << 20))


# ---------------------------------------------------------------------------
# 1) input projection:  out = x @ W_ih^T + (b_ih + b_hh)   (one big GEMM)
# ---------------------------------------------------------------------------

def _linear_kernel(x_ref, wT_ref, b_ref, o_ref):
    x = x_ref[...].astype(wT_ref.dtype)
    o_ref[...] = (jnp.dot(x, wT_ref[...], preferred_element_type=jnp.float32)
                  + b_ref[...]).astype(o_ref.dtype)


def _linear_rows(x2d, wT, b_row, *, max_row_tile=256):
    m, k = x2d.shape
    n = wT.shape[1]
    xp = _pad_rows(x2d)
    m_pad = xp.shape[0]
    tm = _pick_row_tile(m_pad, max_row_tile)
    fp = (2 * (_nbytes((tm, k), xp.dtype) + _nbytes((tm, n), jnp.float32))
          + _nbytes(wT.shape, wT.dtype) + _nbytes(b_row.shape, b_row.dtype))
    out = pl.pallas_call(
        _linear_kernel,
        out_shape=jax.ShapeDtypeStruct((m_pad, n), jnp.float32),
        grid=(m_pad // tm,),
        in_specs=[
            pl.BlockSpec((tm, k), lambda i: (i, 0)),
            pl.BlockSpec((k, n), lambda i: (0, 0)),      # weight resident
            pl.BlockSpec((1, n), lambda i: (0, 0)),      # bias resident
        ],
        out_specs=pl.BlockSpec((tm, n), lambda i: (i, 0)),
        compiler_params=pltpu.CompilerParams(
            dimension_semantics=("parallel",),
            vmem_limit_bytes=_vmem_limit(fp),
        ),
    )(xp, wT, b_row)
    return out[:m]


# ---------------------------------------------------------------------------
# 2) recurrent LSTM kernel (serial path:  h @ W_hh^T + gates only)
# ---------------------------------------------------------------------------

def _lstm_recurrent_kernel(gx_ref, h0_ref, c0_ref, whhT_ref,
                           hseq_ref, hn_ref, cn_ref,
                           h_scr, c_scr, *, hidden, t_chunk):
    tc = pl.program_id(1)

    # (Re)initialize the VMEM-carried state at the first time chunk of every
    # batch tile (time axis is innermost, so this fires once per batch tile).
    @pl.when(tc == 0)
    def _():
        h_scr[...] = h0_ref[...].astype(jnp.float32)
        c_scr[...] = c0_ref[...].astype(jnp.float32)

    w_dtype = whhT_ref.dtype
    whhT = whhT_ref[...]

    # Static unroll over the (short, fixed) time chunk.
    for s in range(t_chunk):
        h_prev = h_scr[...]
        c_prev = c_scr[...]
        gates = gx_ref[:, s, :] + jnp.dot(
            h_prev.astype(w_dtype), whhT, preferred_element_type=jnp.float32)
        # TODO(synk): pad H to a multiple of 128 for production sizes so these
        # gate slices fall on vreg lane boundaries.
        i_g = jax.nn.sigmoid(gates[:, 0 * hidden:1 * hidden])
        f_g = jax.nn.sigmoid(gates[:, 1 * hidden:2 * hidden])
        g_g = jnp.tanh(gates[:, 2 * hidden:3 * hidden])
        o_g = jax.nn.sigmoid(gates[:, 3 * hidden:4 * hidden])
        c_new = f_g * c_prev + i_g * g_g
        h_new = o_g * jnp.tanh(c_new)
        h_scr[...] = h_new
        c_scr[...] = c_new
        hseq_ref[:, s, :] = h_new.astype(hseq_ref.dtype)

    # Final state: written only on the last time chunk (output block is
    # VMEM-resident across the t axis; saves two full-tile stores per step).
    @pl.when(tc == pl.num_programs(1) - 1)
    def _():
        hn_ref[...] = h_scr[...].astype(hn_ref.dtype)
        cn_ref[...] = c_scr[...].astype(cn_ref.dtype)


def _lstm_recurrent(gates_x, h0, c0, whhT, *, batch_tile=None, time_chunk=None):
    B, T, G = gates_x.shape
    H = whhT.shape[0]

    TB = B if batch_tile is None else batch_tile
    assert B % TB == 0 and (TB == B or TB % 8 == 0), "bad batch_tile"
    nb = B // TB

    if time_chunk is None:
        time_chunk = 8 if T % 8 == 0 else T
    assert T % time_chunk == 0 and (time_chunk == T or time_chunk % 8 == 0)
    n_chunks = T // time_chunk

    kernel = functools.partial(_lstm_recurrent_kernel, hidden=H, t_chunk=time_chunk)

    fp = (2 * (_nbytes((TB, time_chunk, G), gates_x.dtype)        # gates_x chunk
               + _nbytes((TB, time_chunk, H), jnp.float32)        # h_seq chunk
               + 4 * _nbytes((TB, H), jnp.float32))               # h0/c0/hn/cn
          + _nbytes((H, G), whhT.dtype)                           # resident W_hh^T
          + 2 * _nbytes((TB, H), jnp.float32))                    # h/c scratch

    h_seq, h_n, c_n = pl.pallas_call(
        kernel,
        out_shape=(
            jax.ShapeDtypeStruct((B, T, H), jnp.float32),
            jax.ShapeDtypeStruct((B, H), jnp.float32),
            jax.ShapeDtypeStruct((B, H), jnp.float32),
        ),
        grid_spec=pltpu.PrefetchScalarGridSpec(
            num_scalar_prefetch=0,
            grid=(nb, n_chunks),                        # time innermost (recurrent)
            in_specs=[
                pl.BlockSpec((TB, time_chunk, G), lambda i, t: (i, t, 0)),  # gates_x
                pl.BlockSpec((TB, H), lambda i, t: (i, 0)),                 # h0
                pl.BlockSpec((TB, H), lambda i, t: (i, 0)),                 # c0
                pl.BlockSpec((H, G), lambda i, t: (0, 0)),                  # W_hh^T resident
            ],
            out_specs=[
                pl.BlockSpec((TB, time_chunk, H), lambda i, t: (i, t, 0)),  # per-step h
                pl.BlockSpec((TB, H), lambda i, t: (i, 0)),                 # h_n
                pl.BlockSpec((TB, H), lambda i, t: (i, 0)),                 # c_n
            ],
            scratch_shapes=[
                pltpu.VMEM((TB, H), jnp.float32),   # recurrent h
                pltpu.VMEM((TB, H), jnp.float32),   # recurrent c
            ],
        ),
        compiler_params=pltpu.CompilerParams(
            dimension_semantics=("parallel", "arbitrary"),
            vmem_limit_bytes=_vmem_limit(fp),
        ),
    )(gates_x, h0, c0, whhT)
    return h_seq, h_n, c_n


# ---------------------------------------------------------------------------
# 3) FC head:  p = relu(h @ W1^T + b1) @ W2^T + b2   (one batched GEMM->GEMM)
# ---------------------------------------------------------------------------

def _mlp_head_kernel(h_ref, w1T_ref, b1_ref, w2T_ref, b2_ref, o_ref):
    h = h_ref[...].astype(w1T_ref.dtype)
    fc1 = jnp.maximum(
        jnp.dot(h, w1T_ref[...], preferred_element_type=jnp.float32) + b1_ref[...],
        0.0)
    o_ref[...] = (jnp.dot(fc1.astype(w2T_ref.dtype), w2T_ref[...],
                          preferred_element_type=jnp.float32)
                  + b2_ref[...]).astype(o_ref.dtype)


def _mlp_head_rows(h2d, w1T, b1_row, w2T, b2_row, *, max_row_tile=256):
    m, hdim = h2d.shape
    fdim = w1T.shape[1]
    odim = w2T.shape[1]
    hp = _pad_rows(h2d)
    m_pad = hp.shape[0]
    tm = _pick_row_tile(m_pad, max_row_tile)
    fp = (2 * (_nbytes((tm, hdim), hp.dtype) + _nbytes((tm, odim), jnp.float32))
          + _nbytes((tm, fdim), jnp.float32)
          + _nbytes(w1T.shape, w1T.dtype) + _nbytes(w2T.shape, w2T.dtype)
          + _nbytes(b1_row.shape, b1_row.dtype) + _nbytes(b2_row.shape, b2_row.dtype))
    out = pl.pallas_call(
        _mlp_head_kernel,
        out_shape=jax.ShapeDtypeStruct((m_pad, odim), jnp.float32),
        grid=(m_pad // tm,),
        in_specs=[
            pl.BlockSpec((tm, hdim), lambda i: (i, 0)),
            pl.BlockSpec((hdim, fdim), lambda i: (0, 0)),   # W1^T resident
            pl.BlockSpec((1, fdim), lambda i: (0, 0)),       # b1 resident
            pl.BlockSpec((fdim, odim), lambda i: (0, 0)),    # W2^T resident
            pl.BlockSpec((1, odim), lambda i: (0, 0)),       # b2 resident
        ],
        out_specs=pl.BlockSpec((tm, odim), lambda i: (i, 0)),
        compiler_params=pltpu.CompilerParams(
            dimension_semantics=("parallel",),
            vmem_limit_bytes=_vmem_limit(fp),
        ),
    )(hp, w1T, b1_row, w2T, b2_row)
    return out[:m]


# ---------------------------------------------------------------------------
# full forward
# ---------------------------------------------------------------------------

def lstm2fc_forward(x, h0, c0, W_ih, W_hh, b_ih, b_hh, W1, b1, W2, b2,
                    *, batch_tile=None, time_chunk=None,
                    weight_dtype=jnp.float32):
    """x: (B,T,n_inp); h0/c0: (1,B,H); returns p (B,T,O), (h_n, c_n) (1,B,H)."""
    B, T, n_inp = x.shape
    H = W_hh.shape[1]
    F = W1.shape[0]
    O = W2.shape[0]

    # One-time layout glue (outside every loop): transpose weights for the MXU,
    # fold the two LSTM biases, optionally cast resident weights to bf16.
    wihT = W_ih.T.astype(weight_dtype)                       # (n_inp, 4H)
    whhT = W_hh.T.astype(weight_dtype)                       # (H, 4H)
    b_gates = (b_ih + b_hh).reshape(1, 4 * H).astype(jnp.float32)
    w1T = W1.T.astype(weight_dtype)                          # (H, F)
    w2T = W2.T.astype(weight_dtype)                          # (F, O)
    b1r = b1.reshape(1, F).astype(jnp.float32)
    b2r = b2.reshape(1, O).astype(jnp.float32)

    # 1) input projection for ALL timesteps as one big GEMM (batch-major).
    gates_x = _linear_rows(x.reshape(B * T, n_inp), wihT, b_gates)
    gates_x = gates_x.reshape(B, T, 4 * H)

    # 2) recurrent part: only h @ W_hh^T + nonlinearities on the serial path.
    h_seq, h_n, c_n = _lstm_recurrent(
        gates_x, h0.reshape(B, H), c0.reshape(B, H), whhT,
        batch_tile=batch_tile, time_chunk=time_chunk)

    # 3) FC head over all B*T rows (one batched GEMM -> ReLU -> GEMM).
    p = _mlp_head_rows(h_seq.reshape(B * T, H), w1T, b1r, w2T, b2r)
    p = p.reshape(B, T, O)

    return p, (h_n.reshape(1, B, H), c_n.reshape(1, B, H))


# ---------------------------------------------------------------------------
# float64 numpy reference (matches PyTorch LSTM2FC forward)
# ---------------------------------------------------------------------------

def _lstm2fc_reference(x, h0, c0, W_ih, W_hh, b_ih, b_hh, W1, b1, W2, b2):
    x, h0, c0, W_ih, W_hh, b_ih, b_hh, W1, b1, W2, b2 = [
        np.asarray(a, dtype=np.float64)
        for a in (x, h0, c0, W_ih, W_hh, b_ih, b_hh, W1, b1, W2, b2)]

    def sigm(z):
        return 1.0 / (1.0 + np.exp(-z))

    B, T, _ = x.shape
    H = W_hh.shape[1]
    h = h0[0]
    c = c0[0]
    outs = []
    for t in range(T):
        gates = x[:, t] @ W_ih.T + b_ih + h @ W_hh.T + b_hh
        i_g = sigm(gates[:, 0 * H:1 * H])
        f_g = sigm(gates[:, 1 * H:2 * H])
        g_g = np.tanh(gates[:, 2 * H:3 * H])
        o_g = sigm(gates[:, 3 * H:4 * H])
        c = f_g * c + i_g * g_g
        h = o_g * np.tanh(c)
        outs.append(h)
    lstm_out = np.stack(outs, axis=1)                        # (B, T, H)
    fc1 = np.maximum(lstm_out @ W1.T + b1, 0.0)
    p = fc1 @ W2.T + b2
    return p, h[None], c[None]


if __name__ == "__main__":
    B, T = 2, 8
    n_inputs, n_rnn_hidden, n_fc_hidden, n_outputs = 16, 32, 64, 8

    key = jax.random.PRNGKey(0)
    (kx, kh, kc, kwih, kwhh, kbih, kbhh, kw1, kb1, kw2, kb2) = jax.random.split(key, 11)

    x = jax.random.normal(kx, (B, T, n_inputs), dtype=jnp.float32)
    h0 = jax.random.normal(kh, (1, B, n_rnn_hidden), dtype=jnp.float32)
    c0 = jax.random.normal(kc, (1, B, n_rnn_hidden), dtype=jnp.float32)

    # nn.LSTM init: U(-1/sqrt(H), 1/sqrt(H)); nn.Linear: U(-1/sqrt(fan_in), ...)
    bh = 1.0 / (n_rnn_hidden ** 0.5)
    W_ih = jax.random.uniform(kwih, (4 * n_rnn_hidden, n_inputs), jnp.float32, -bh, bh)
    W_hh = jax.random.uniform(kwhh, (4 * n_rnn_hidden, n_rnn_hidden), jnp.float32, -bh, bh)
    b_ih = jax.random.uniform(kbih, (4 * n_rnn_hidden,), jnp.float32, -bh, bh)
    b_hh = jax.random.uniform(kbhh, (4 * n_rnn_hidden,), jnp.float32, -bh, bh)

    b1f = 1.0 / (n_rnn_hidden ** 0.5)
    W1 = jax.random.uniform(kw1, (n_fc_hidden, n_rnn_hidden), jnp.float32, -b1f, b1f)
    b1 = jax.random.uniform(kb1, (n_fc_hidden,), jnp.float32, -b1f, b1f)
    b2f = 1.0 / (n_fc_hidden ** 0.5)
    W2 = jax.random.uniform(kw2, (n_outputs, n_fc_hidden), jnp.float32, -b2f, b2f)
    b2 = jax.random.uniform(kb2, (n_outputs,), jnp.float32, -b2f, b2f)

    fwd = jax.jit(lstm2fc_forward)
    p, (h_n, c_n) = fwd(x, h0, c0, W_ih, W_hh, b_ih, b_hh, W1, b1, W2, b2)
    jax.block_until_ready((p, h_n, c_n))

    p_ref, h_ref, c_ref = _lstm2fc_reference(
        x, h0, c0, W_ih, W_hh, b_ih, b_hh, W1, b1, W2, b2)

    # Tolerance covers MXU bf16-pass rounding of f32 matmuls vs the f64
    # reference; structural bugs (gate order, bias folding, recurrence) would
    # produce errors orders of magnitude larger.
    assert np.allclose(np.asarray(p), p_ref, atol=1e-2, rtol=1e-2), "FC output mismatch"
    assert np.allclose(np.asarray(h_n), h_ref, atol=1e-2, rtol=1e-2), "h_n mismatch"
    assert np.allclose(np.asarray(c_n), c_ref, atol=1e-2, rtol=1e-2), "c_n mismatch"

    print("KERNEL_OK")
</pallas_src>

<mosaic_0001>
module attributes {stable_mosaic.version = 11 : i64} {
  func.func @_linear_kernel(%arg0: i32, %arg1: memref<16x16xf32, #tpu.memory_space<vmem>>, %arg2: memref<16x128xf32, #tpu.memory_space<vmem>>, %arg3: memref<1x128xf32, #tpu.memory_space<vmem>>, %arg4: memref<16x128xf32, #tpu.memory_space<vmem>>) attributes {dimension_semantics = [#tpu.dimension_semantics<parallel>], iteration_bounds = array<i64: 1>, scalar_prefetch = 0 : i64, scratch_operands = 0 : i64, tpu.core_type = #tpu.core_type<tc>, window_params = [{transform_indices = @transform_0, window_bounds = array<i64: 16, 16>}, {pipeline_mode = #tpu.pipeline_mode<synchronous>, transform_indices = @transform_1, window_bounds = array<i64: 16, 128>}, {pipeline_mode = #tpu.pipeline_mode<synchronous>, transform_indices = @transform_2, window_bounds = array<i64: 1, 128>}, {transform_indices = @transform_3, window_bounds = array<i64: 16, 128>}]} {
    %c0 = arith.constant 0 : index
    %c0_0 = arith.constant 0 : index
    %0 = vector.load %arg1[%c0, %c0_0] : memref<16x16xf32, #tpu.memory_space<vmem>>, vector<16x16xf32>
    %c0_1 = arith.constant 0 : index
    %c0_2 = arith.constant 0 : index
    %1 = vector.load %arg2[%c0_1, %c0_2] : memref<16x128xf32, #tpu.memory_space<vmem>>, vector<16x128xf32>
    %cst = arith.constant dense<0.000000e+00> : vector<16x128xf32>
    %2 = tpu.matmul %0, %1, %cst {dimension_numbers = #tpu.dot_dimension_numbers<[1], [0], [0], [1], [0, 0, 1, 1], [], []>} : vector<16x16xf32>, vector<16x128xf32>, vector<16x128xf32> -> vector<16x128xf32>
    %c0_3 = arith.constant 0 : index
    %c0_4 = arith.constant 0 : index
    %3 = vector.load %arg3[%c0_3, %c0_4] : memref<1x128xf32, #tpu.memory_space<vmem>>, vector<1x128xf32>
    %4 = vector.broadcast %3 : vector<1x128xf32> to vector<16x128xf32>
    %5 = arith.addf %2, %4 : vector<16x128xf32>
    %c0_5 = arith.constant 0 : index
    %c0_6 = arith.constant 0 : index
    %6 = vector.load %arg4[%c0_5, %c0_6] : memref<16x128xf32, #tpu.memory_space<vmem>>, vector<16x128xf32>
    tpu.vector_store %arg4[%c0_5, %c0_6], %5 {strides = array<i32>} : memref<16x128xf32, #tpu.memory_space<vmem>>, vector<16x128xf32>,
    return
  }
  func.func @transform_0(%arg0: i32) -> (i32, i32) {
    %c0_i32 = arith.constant 0 : i32
    %c0_i32_0 = arith.constant 0 : i32
    return %arg0, %c0_i32 : i32, i32
  }
  func.func @transform_1(%arg0: i32) -> (i32, i32) {
    %c0_i32 = arith.constant 0 : i32
    %c0_i32_0 = arith.constant 0 : i32
    %c0_i32_1 = arith.constant 0 : i32
    return %c0_i32, %c0_i32_0 : i32, i32
  }
  func.func @transform_2(%arg0: i32) -> (i32, i32) {
    %c0_i32 = arith.constant 0 : i32
    %c0_i32_0 = arith.constant 0 : i32
    %c0_i32_1 = arith.constant 0 : i32
    return %c0_i32, %c0_i32_0 : i32, i32
  }
  func.func @transform_3(%arg0: i32) -> (i32, i32) {
    %c0_i32 = arith.constant 0 : i32
    %c0_i32_0 = arith.constant 0 : i32
    return %arg0, %c0_i32 : i32, i32
  }
}

module attributes {stable_mosaic.version = 11 : i64} {
  func.func @_lstm_recurrent_kernel(%arg0: i32, %arg1: i32, %arg2: memref<2x8x128xf32, #tpu.memory_space<vmem>>, %arg3: memref<2x32xf32, #tpu.memory_space<vmem>>, %arg4: memref<2x32xf32, #tpu.memory_space<vmem>>, %arg5: memref<32x128xf32, #tpu.memory_space<vmem>>, %arg6: memref<2x8x32xf32, #tpu.memory_space<vmem>>, %arg7: memref<2x32xf32, #tpu.memory_space<vmem>>, %arg8: memref<2x32xf32, #tpu.memory_space<vmem>>, %arg9: memref<2x32xf32, #tpu.memory_space<vmem>>, %arg10: memref<2x32xf32, #tpu.memory_space<vmem>>) attributes {dimension_semantics = [#tpu.dimension_semantics<parallel>, #tpu.dimension_semantics<arbitrary>], iteration_bounds = array<i64: 1, 1>, scalar_prefetch = 0 : i64, scratch_operands = 2 : i64, tpu.core_type = #tpu.core_type<tc>, window_params = [{transform_indices = @transform_0, window_bounds = array<i64: 2, 8, 128>}, {transform_indices = @transform_1, window_bounds = array<i64: 2, 32>}, {transform_indices = @transform_2, window_bounds = array<i64: 2, 32>}, {pipeline_mode = #tpu.pipeline_mode<synchronous>, transform_indices = @transform_3, window_bounds = array<i64: 32, 128>}, {transform_indices = @transform_4, window_bounds = array<i64: 2, 8, 32>}, {transform_indices = @transform_5, window_bounds = array<i64: 2, 32>}, {transform_indices = @transform_6, window_bounds = array<i64: 2, 32>}]} {
    %c0_i32 = arith.constant 0 : i32
    %0 = arith.cmpi eq, %arg1, %c0_i32 : i32
    %1 = arith.extui %0 : i1 to i32
    %c0_i32_0 = arith.constant 0 : i32
    %2 = arith.cmpi ne, %1, %c0_i32_0 : i32
    scf.if %2 {
      %c0_140 = arith.constant 0 : index
      %c0_141 = arith.constant 0 : index
      %295 = vector.load %arg3[%c0_140, %c0_141] : memref<2x32xf32, #tpu.memory_space<vmem>>, vector<2x32xf32>
      %c0_142 = arith.constant 0 : index
      %c0_143 = arith.constant 0 : index
      %296 = vector.load %arg9[%c0_142, %c0_143] : memref<2x32xf32, #tpu.memory_space<vmem>>, vector<2x32xf32>
      tpu.vector_store %arg9[%c0_142, %c0_143], %295 {strides = array<i32>} : memref<2x32xf32, #tpu.memory_space<vmem>>, vector<2x32xf32>,
      %c0_144 = arith.constant 0 : index
      %c0_145 = arith.constant 0 : index
      %297 = vector.load %arg4[%c0_144, %c0_145] : memref<2x32xf32, #tpu.memory_space<vmem>>, vector<2x32xf32>
      %c0_146 = arith.constant 0 : index
      %c0_147 = arith.constant 0 : index
      %298 = vector.load %arg10[%c0_146, %c0_147] : memref<2x32xf32, #tpu.memory_space<vmem>>, vector<2x32xf32>
      tpu.vector_store %arg10[%c0_146, %c0_147], %297 {strides = array<i32>} : memref<2x32xf32, #tpu.memory_space<vmem>>, vector<2x32xf32>,
    } else {
    }
    %c0 = arith.constant 0 : index
    %c0_1 = arith.constant 0 : index
    %3 = vector.load %arg5[%c0, %c0_1] : memref<32x128xf32, #tpu.memory_space<vmem>>, vector<32x128xf32>
    %c0_2 = arith.constant 0 : index
    %c0_3 = arith.constant 0 : index
    %4 = vector.load %arg9[%c0_2, %c0_3] : memref<2x32xf32, #tpu.memory_space<vmem>>, vector<2x32xf32>
    %c0_4 = arith.constant 0 : index
    %c0_5 = arith.constant 0 : index
    %5 = vector.load %arg10[%c0_4, %c0_5] : memref<2x32xf32, #tpu.memory_space<vmem>>, vector<2x32xf32>
    %c0_6 = arith.constant 0 : index
    %c0_7 = arith.constant 0 : index
    %c0_8 = arith.constant 0 : index
    %6 = vector.load %arg2[%c0_6, %c0_7, %c0_8] : memref<2x8x128xf32, #tpu.memory_space<vmem>>, vector<2x1x128xf32>
    %7 = vector.shape_cast %6 : vector<2x1x128xf32> to vector<2x128xf32>
    %cst = arith.constant dense<0.000000e+00> : vector<2x128xf32>
    %8 = tpu.matmul %4, %3, %cst {dimension_numbers = #tpu.dot_dimension_numbers<[1], [0], [0], [1], [0, 0, 1, 1], [], []>} : vector<2x32xf32>, vector<32x128xf32>, vector<2x128xf32> -> vector<2x128xf32>
    %9 = arith.addf %7, %8 : vector<2x128xf32>
    %10 = vector.extract_strided_slice %9 {offsets = [0, 0], sizes = [2, 32], strides = [1, 1]} : vector<2x128xf32> to vector<2x32xf32>
    %11 = arith.negf %10 : vector<2x32xf32>
    %12 = math.exp %11 : vector<2x32xf32>
    %cst_9 = arith.constant 1.000000e+00 : f32
    %13 = vector.broadcast %cst_9 : f32 to vector<2x32xf32>
    %14 = arith.addf %13, %12 : vector<2x32xf32>
    %15 = arith.divf %13, %14 : vector<2x32xf32>
    %16 = vector.extract_strided_slice %9 {offsets = [0, 32], sizes = [2, 32], strides = [1, 1]} : vector<2x128xf32> to vector<2x32xf32>
    %17 = arith.negf %16 : vector<2x32xf32>
    %18 = math.exp %17 : vector<2x32xf32>
    %cst_10 = arith.constant 1.000000e+00 : f32
    %19 = vector.broadcast %cst_10 : f32 to vector<2x32xf32>
    %20 = arith.addf %19, %18 : vector<2x32xf32>
    %21 = arith.divf %19, %20 : vector<2x32xf32>
    %22 = vector.extract_strided_slice %9 {offsets = [0, 64], sizes = [2, 32], strides = [1, 1]} : vector<2x128xf32> to vector<2x32xf32>
    %23 = math.tanh %22 : vector<2x32xf32>
    %24 = vector.extract_strided_slice %9 {offsets = [0, 96], sizes = [2, 32], strides = [1, 1]} : vector<2x128xf32> to vector<2x32xf32>
    %25 = arith.negf %24 : vector<2x32xf32>
    %26 = math.exp %25 : vector<2x32xf32>
    %cst_11 = arith.constant 1.000000e+00 : f32
    %27 = vector.broadcast %cst_11 : f32 to vector<2x32xf32>
    %28 = arith.addf %27, %26 : vector<2x32xf32>
    %29 = arith.divf %27, %28 : vector<2x32xf32>
    %30 = arith.mulf %21, %5 : vector<2x32xf32>
    %31 = arith.mulf %15, %23 : vector<2x32xf32>
    %32 = arith.addf %30, %31 : vector<2x32xf32>
    %33 = math.tanh %32 : vector<2x32xf32>
    %34 = arith.mulf %29, %33 : vector<2x32xf32>
    %c0_12 = arith.constant 0 : index
    %c0_13 = arith.constant 0 : index
    %35 = vector.load %arg9[%c0_12, %c0_13] : memref<2x32xf32, #tpu.memory_space<vmem>>, vector<2x32xf32>
    tpu.vector_store %arg9[%c0_12, %c0_13], %34 {strides = array<i32>} : memref<2x32xf32, #tpu.memory_space<vmem>>, vector<2x32xf32>,
    %c0_14 = arith.constant 0 : index
    %c0_15 = arith.constant 0 : index
    %36 = vector.load %arg10[%c0_14, %c0_15] : memref<2x32xf32, #tpu.memory_space<vmem>>, vector<2x32xf32>
    tpu.vector_store %arg10[%c0_14, %c0_15], %32 {strides = array<i32>} : memref<2x32xf32, #tpu.memory_space<vmem>>, vector<2x32xf32>,
    %c0_16 = arith.constant 0 : index
    %c0_17 = arith.constant 0 : index
    %c0_18 = arith.constant 0 : index
    %37 = vector.load %arg6[%c0_16, %c0_17, %c0_18] : memref<2x8x32xf32, #tpu.memory_space<vmem>>, vector<2x1x32xf32>
    %38 = vector.shape_cast %37 : vector<2x1x32xf32> to vector<2x32xf32>
    %39 = vector.shape_cast %34 : vector<2x32xf32> to vector<2x1x32xf32>
    tpu.vector_store %arg6[%c0_16, %c0_17, %c0_18], %39 {strides = array<i32>} : memref<2x8x32xf32, #tpu.memory_space<vmem>>, vector<2x1x32xf32>,
    %c0_19 = arith.constant 0 : index
    %c0_20 = arith.constant 0 : index
    %40 = vector.load %arg9[%c0_19, %c0_20] : memref<2x32xf32, #tpu.memory_space<vmem>>, vector<2x32xf32>
    %c0_21 = arith.constant 0 : index
    %c0_22 = arith.constant 0 : index
    %41 = vector.load %arg10[%c0_21, %c0_22] : memref<2x32xf32, #tpu.memory_space<vmem>>, vector<2x32xf32>
    %c0_23 = arith.constant 0 : index
    %c1 = arith.constant 1 : index
    %c0_24 = arith.constant 0 : index
    %42 = vector.load %arg2[%c0_23, %c1, %c0_24] : memref<2x8x128xf32, #tpu.memory_space<vmem>>, vector<2x1x128xf32>
    %43 = vector.shape_cast %42 : vector<2x1x128xf32> to vector<2x128xf32>
    %cst_25 = arith.constant dense<0.000000e+00> : vector<2x128xf32>
    %44 = tpu.matmul %40, %3, %cst_25 {dimension_numbers = #tpu.dot_dimension_numbers<[1], [0], [0], [1], [0, 0, 1, 1], [], []>} : vector<2x32xf32>, vector<32x128xf32>, vector<2x128xf32> -> vector<2x128xf32>
    %45 = arith.addf %43, %44 : vector<2x128xf32>
    %46 = vector.extract_strided_slice %45 {offsets = [0, 0], sizes = [2, 32], strides = [1, 1]} : vector<2x128xf32> to vector<2x32xf32>
    %47 = arith.negf %46 : vector<2x32xf32>
    %48 = math.exp %47 : vector<2x32xf32>
    %cst_26 = arith.constant 1.000000e+00 : f32
    %49 = vector.broadcast %cst_26 : f32 to vector<2x32xf32>
    %50 = arith.addf %49, %48 : vector<2x32xf32>
    %51 = arith.divf %49, %50 : vector<2x32xf32>
    %52 = vector.extract_strided_slice %45 {offsets = [0, 32], sizes = [2, 32], strides = [1, 1]} : vector<2x128xf32> to vector<2x32xf32>
    %53 = arith.negf %52 : vector<2x32xf32>
    %54 = math.exp %53 : vector<2x32xf32>
    %cst_27 = arith.constant 1.000000e+00 : f32
    %55 = vector.broadcast %cst_27 : f32 to vector<2x32xf32>
    %56 = arith.addf %55, %54 : vector<2x32xf32>
    %57 = arith.divf %55, %56 : vector<2x32xf32>
    %58 = vector.extract_strided_slice %45 {offsets = [0, 64], sizes = [2, 32], strides = [1, 1]} : vector<2x128xf32> to vector<2x32xf32>
    %59 = math.tanh %58 : vector<2x32xf32>
    %60 = vector.extract_strided_slice %45 {offsets = [0, 96], sizes = [2, 32], strides = [1, 1]} : vector<2x128xf32> to vector<2x32xf32>
    %61 = arith.negf %60 : vector<2x32xf32>
    %62 = math.exp %61 : vector<2x32xf32>
    %cst_28 = arith.constant 1.000000e+00 : f32
    %63 = vector.broadcast %cst_28 : f32 to vector<2x32xf32>
    %64 = arith.addf %63, %62 : vector<2x32xf32>
    %65 = arith.divf %63, %64 : vector<2x32xf32>
    %66 = arith.mulf %57, %41 : vector<2x32xf32>
    %67 = arith.mulf %51, %59 : vector<2x32xf32>
    %68 = arith.addf %66, %67 : vector<2x32xf32>
    %69 = math.tanh %68 : vector<2x32xf32>
    %70 = arith.mulf %65, %69 : vector<2x32xf32>
    %c0_29 = arith.constant 0 : index
    %c0_30 = arith.constant 0 : index
    %71 = vector.load %arg9[%c0_29, %c0_30] : memref<2x32xf32, #tpu.memory_space<vmem>>, vector<2x32xf32>
    tpu.vector_store %arg9[%c0_29, %c0_30], %70 {strides = array<i32>} : memref<2x32xf32, #tpu.memory_space<vmem>>, vector<2x32xf32>,
    %c0_31 = arith.constant 0 : index
    %c0_32 = arith.constant 0 : index
    %72 = vector.load %arg10[%c0_31, %c0_32] : memref<2x32xf32, #tpu.memory_space<vmem>>, vector<2x32xf32>
    tpu.vector_store %arg10[%c0_31, %c0_32], %68 {strides = array<i32>} : memref<2x32xf32, #tpu.memory_space<vmem>>, vector<2x32xf32>,
    %c0_33 = arith.constant 0 : index
    %c1_34 = arith.constant 1 : index
    %c0_35 = arith.constant 0 : index
    %73 = vector.load %arg6[%c0_33, %c1_34, %c0_35] : memref<2x8x32xf32, #tpu.memory_space<vmem>>, vector<2x1x32xf32>
    %74 = vector.shape_cast %73 : vector<2x1x32xf32> to vector<2x32xf32>
    %75 = vector.shape_cast %70 : vector<2x32xf32> to vector<2x1x32xf32>
    tpu.vector_store %arg6[%c0_33, %c1_34, %c0_35], %75 {strides = array<i32>} : memref<2x8x32xf32, #tpu.memory_space<vmem>>, vector<2x1x32xf32>,
    %c0_36 = arith.constant 0 : index
    %c0_37 = arith.constant 0 : index
    %76 = vector.load %arg9[%c0_36, %c0_37] : memref<2x32xf32, #tpu.memory_space<vmem>>, vector<2x32xf32>
    %c0_38 = arith.constant 0 : index
    %c0_39 = arith.constant 0 : index
    %77 = vector.load %arg10[%c0_38, %c0_39] : memref<2x32xf32, #tpu.memory_space<vmem>>, vector<2x32xf32>
    %c0_40 = arith.constant 0 : index
    %c2 = arith.constant 2 : index
    %c0_41 = arith.constant 0 : index
    %78 = vector.load %arg2[%c0_40, %c2, %c0_41] : memref<2x8x128xf32, #tpu.memory_space<vmem>>, vector<2x1x128xf32>
    %79 = vector.shape_cast %78 : vector<2x1x128xf32> to vector<2x128xf32>
    %cst_42 = arith.constant dense<0.000000e+00> : vector<2x128xf32>
    %80 = tpu.matmul %76, %3, %cst_42 {dimension_numbers = #tpu.dot_dimension_numbers<[1], [0], [0], [1], [0, 0, 1, 1], [], []>} : vector<2x32xf32>, vector<32x128xf32>, vector<2x128xf32> -> vector<2x128xf32>
    %81 = arith.addf %79, %80 : vector<2x128xf32>
    %82 = vector.extract_strided_slice %81 {offsets = [0, 0], sizes = [2, 32], strides = [1, 1]} : vector<2x128xf32> to vector<2x32xf32>
    %83 = arith.negf %82 : vector<2x32xf32>
    %84 = math.exp %83 : vector<2x32xf32>
    %cst_43 = arith.constant 1.000000e+00 : f32
    %85 = vector.broadcast %cst_43 : f32 to vector<2x32xf32>
    %86 = arith.addf %85, %84 : vector<2x32xf32>
    %87 = arith.divf %85, %86 : vector<2x32xf32>
    %88 = vector.extract_strided_slice %81 {offsets = [0, 32], sizes = [2, 32], strides = [1, 1]} : vector<2x128xf32> to vector<2x32xf32>
    %89 = arith.negf %88 : vector<2x32xf32>
    %90 = math.exp %89 : vector<2x32xf32>
    %cst_44 = arith.constant 1.000000e+00 : f32
    %91 = vector.broadcast %cst_44 : f32 to vector<2x32xf32>
    %92 = arith.addf %91, %90 : vector<2x32xf32>
    %93 = arith.divf %91, %92 : vector<2x32xf32>
    %94 = vector.extract_strided_slice %81 {offsets = [0, 64], sizes = [2, 32], strides = [1, 1]} : vector<2x128xf32> to vector<2x32xf32>
    %95 = math.tanh %94 : vector<2x32xf32>
    %96 = vector.extract_strided_slice %81 {offsets = [0, 96], sizes = [2, 32], strides = [1, 1]} : vector<2x128xf32> to vector<2x32xf32>
    %97 = arith.negf %96 : vector<2x32xf32>
    %98 = math.exp %97 : vector<2x32xf32>
    %cst_45 = arith.constant 1.000000e+00 : f32
    %99 = vector.broadcast %cst_45 : f32 to vector<2x32xf32>
    %100 = arith.addf %99, %98 : vector<2x32xf32>
    %101 = arith.divf %99, %100 : vector<2x32xf32>
    %102 = arith.mulf %93, %77 : vector<2x32xf32>
    %103 = arith.mulf %87, %95 : vector<2x32xf32>
    %104 = arith.addf %102, %103 : vector<2x32xf32>
    %105 = math.tanh %104 : vector<2x32xf32>
    %106 = arith.mulf %101, %105 : vector<2x32xf32>
    %c0_46 = arith.constant 0 : index
    %c0_47 = arith.constant 0 : index
    %107 = vector.load %arg9[%c0_46, %c0_47] : memref<2x32xf32, #tpu.memory_space<vmem>>, vector<2x32xf32>
    tpu.vector_store %arg9[%c0_46, %c0_47], %106 {strides = array<i32>} : memref<2x32xf32, #tpu.memory_space<vmem>>, vector<2x32xf32>,
    %c0_48 = arith.constant 0 : index
    %c0_49 = arith.constant 0 : index
    %108 = vector.load %arg10[%c0_48, %c0_49] : memref<2x32xf32, #tpu.memory_space<vmem>>, vector<2x32xf32>
    tpu.vector_store %arg10[%c0_48, %c0_49], %104 {strides = array<i32>} : memref<2x32xf32, #tpu.memory_space<vmem>>, vector<2x32xf32>,
    %c0_50 = arith.constant 0 : index
    %c2_51 = arith.constant 2 : index
    %c0_52 = arith.constant 0 : index
    %109 = vector.load %arg6[%c0_50, %c2_51, %c0_52] : memref<2x8x32xf32, #tpu.memory_space<vmem>>, vector<2x1x32xf32>
    %110 = vector.shape_cast %109 : vector<2x1x32xf32> to vector<2x32xf32>
    %111 = vector.shape_cast %106 : vector<2x32xf32> to vector<2x1x32xf32>
    tpu.vector_store %arg6[%c0_50, %c2_51, %c0_52], %111 {strides = array<i32>} : memref<2x8x32xf32, #tpu.memory_space<vmem>>, vector<2x1x32xf32>,
    %c0_53 = arith.constant 0 : index
    %c0_54 = arith.constant 0 : index
    %112 = vector.load %arg9[%c0_53, %c0_54] : memref<2x32xf32, #tpu.memory_space<vmem>>, vector<2x32xf32>
    %c0_55 = arith.constant 0 : index
    %c0_56 = arith.constant 0 : index
    %113 = vector.load %arg10[%c0_55, %c0_56] : memref<2x32xf32, #tpu.memory_space<vmem>>, vector<2x32xf32>
    %c0_57 = arith.constant 0 : index
    %c3 = arith.constant 3 : index
    %c0_58 = arith.constant 0 : index
    %114 = vector.load %arg2[%c0_57, %c3, %c0_58] : memref<2x8x128xf32, #tpu.memory_space<vmem>>, vector<2x1x128xf32>
    %115 = vector.shape_cast %114 : vector<2x1x128xf32> to vector<2x128xf32>
    %cst_59 = arith.constant dense<0.000000e+00> : vector<2x128xf32>
    %116 = tpu.matmul %112, %3, %cst_59 {dimension_numbers = #tpu.dot_dimension_numbers<[1], [0], [0], [1], [0, 0, 1, 1], [], []>} : vector<2x32xf32>, vector<32x128xf32>, vector<2x128xf32> -> vector<2x128xf32>
    %117 = arith.addf %115, %116 : vector<2x128xf32>
    %118 = vector.extract_strided_slice %117 {offsets = [0, 0], sizes = [2, 32], strides = [1, 1]} : vector<2x128xf32> to vector<2x32xf32>
    %119 = arith.negf %118 : vector<2x32xf32>
    %120 = math.exp %119 : vector<2x32xf32>
    %cst_60 = arith.constant 1.000000e+00 : f32
    %121 = vector.broadcast %cst_60 : f32 to vector<2x32xf32>
    %122 = arith.addf %121, %120 : vector<2x32xf32>
    %123 = arith.divf %121, %122 : vector<2x32xf32>
    %124 = vector.extract_strided_slice %117 {offsets = [0, 32], sizes = [2, 32], strides = [1, 1]} : vector<2x128xf32> to vector<2x32xf32>
    %125 = arith.negf %124 : vector<2x32xf32>
    %126 = math.exp %125 : vector<2x32xf32>
    %cst_61 = arith.constant 1.000000e+00 : f32
    %127 = vector.broadcast %cst_61 : f32 to vector<2x32xf32>
    %128 = arith.addf %127, %126 : vector<2x32xf32>
    %129 = arith.divf %127, %128 : vector<2x32xf32>
    %130 = vector.extract_strided_slice %117 {offsets = [0, 64], sizes = [2, 32], strides = [1, 1]} : vector<2x128xf32> to vector<2x32xf32>
    %131 = math.tanh %130 : vector<2x32xf32>
    %132 = vector.extract_strided_slice %117 {offsets = [0, 96], sizes = [2, 32], strides = [1, 1]} : vector<2x128xf32> to vector<2x32xf32>
    %133 = arith.negf %132 : vector<2x32xf32>
    %134 = math.exp %133 : vector<2x32xf32>
    %cst_62 = arith.constant 1.000000e+00 : f32
    %135 = vector.broadcast %cst_62 : f32 to vector<2x32xf32>
    %136 = arith.addf %135, %134 : vector<2x32xf32>
    %137 = arith.divf %135, %136 : vector<2x32xf32>
    %138 = arith.mulf %129, %113 : vector<2x32xf32>
    %139 = arith.mulf %123, %131 : vector<2x32xf32>
    %140 = arith.addf %138, %139 : vector<2x32xf32>
    %141 = math.tanh %140 : vector<2x32xf32>
    %142 = arith.mulf %137, %141 : vector<2x32xf32>
    %c0_63 = arith.constant 0 : index
    %c0_64 = arith.constant 0 : index
    %143 = vector.load %arg9[%c0_63, %c0_64] : memref<2x32xf32, #tpu.memory_space<vmem>>, vector<2x32xf32>
    tpu.vector_store %arg9[%c0_63, %c0_64], %142 {strides = array<i32>} : memref<2x32xf32, #tpu.memory_space<vmem>>, vector<2x32xf32>,
    %c0_65 = arith.constant 0 : index
    %c0_66 = arith.constant 0 : index
    %144 = vector.load %arg10[%c0_65, %c0_66] : memref<2x32xf32, #tpu.memory_space<vmem>>, vector<2x32xf32>
    tpu.vector_store %arg10[%c0_65, %c0_66], %140 {strides = array<i32>} : memref<2x32xf32, #tpu.memory_space<vmem>>, vector<2x32xf32>,
    %c0_67 = arith.constant 0 : index
    %c3_68 = arith.constant 3 : index
    %c0_69 = arith.constant 0 : index
    %145 = vector.load %arg6[%c0_67, %c3_68, %c0_69] : memref<2x8x32xf32, #tpu.memory_space<vmem>>, vector<2x1x32xf32>
    %146 = vector.shape_cast %145 : vector<2x1x32xf32> to vector<2x32xf32>
    %147 = vector.shape_cast %142 : vector<2x32xf32> to vector<2x1x32xf32>
    tpu.vector_store %arg6[%c0_67, %c3_68, %c0_69], %147 {strides = array<i32>} : memref<2x8x32xf32, #tpu.memory_space<vmem>>, vector<2x1x32xf32>,
    %c0_70 = arith.constant 0 : index
    %c0_71 = arith.constant 0 : index
    %148 = vector.load %arg9[%c0_70, %c0_71] : memref<2x32xf32, #tpu.memory_space<vmem>>, vector<2x32xf32>
    %c0_72 = arith.constant 0 : index
    %c0_73 = arith.constant 0 : index
    %149 = vector.load %arg10[%c0_72, %c0_73] : memref<2x32xf32, #tpu.memory_space<vmem>>, vector<2x32xf32>
    %c0_74 = arith.constant 0 : index
    %c4 = arith.constant 4 : index
    %c0_75 = arith.constant 0 : index
    %150 = vector.load %arg2[%c0_74, %c4, %c0_75] : memref<2x8x128xf32, #tpu.memory_space<vmem>>, vector<2x1x128xf32>
    %151 = vector.shape_cast %150 : vector<2x1x128xf32> to vector<2x128xf32>
    %cst_76 = arith.constant dense<0.000000e+00> : vector<2x128xf32>
    %152 = tpu.matmul %148, %3, %cst_76 {dimension_numbers = #tpu.dot_dimension_numbers<[1], [0], [0], [1], [0, 0, 1, 1], [], []>} : vector<2x32xf32>, vector<32x128xf32>, vector<2x128xf32> -> vector<2x128xf32>
    %153 = arith.addf %151, %152 : vector<2x128xf32>
    %154 = vector.extract_strided_slice %153 {offsets = [0, 0], sizes = [2, 32], strides = [1, 1]} : vector<2x128xf32> to vector<2x32xf32>
    %155 = arith.negf %154 : vector<2x32xf32>
    %156 = math.exp %155 : vector<2x32xf32>
    %cst_77 = arith.constant 1.000000e+00 : f32
    %157 = vector.broadcast %cst_77 : f32 to vector<2x32xf32>
    %158 = arith.addf %157, %156 : vector<2x32xf32>
    %159 = arith.divf %157, %158 : vector<2x32xf32>
    %160 = vector.extract_strided_slice %153 {offsets = [0, 32], sizes = [2, 32], strides = [1, 1]} : vector<2x128xf32> to vector<2x32xf32>
    %161 = arith.negf %160 : vector<2x32xf32>
    %162 = math.exp %161 : vector<2x32xf32>
    %cst_78 = arith.constant 1.000000e+00 : f32
    %163 = vector.broadcast %cst_78 : f32 to vector<2x32xf32>
    %164 = arith.addf %163, %162 : vector<2x32xf32>
    %165 = arith.divf %163, %164 : vector<2x32xf32>
    %166 = vector.extract_strided_slice %153 {offsets = [0, 64], sizes = [2, 32], strides = [1, 1]} : vector<2x128xf32> to vector<2x32xf32>
    %167 = math.tanh %166 : vector<2x32xf32>
    %168 = vector.extract_strided_slice %153 {offsets = [0, 96], sizes = [2, 32], strides = [1, 1]} : vector<2x128xf32> to vector<2x32xf32>
    %169 = arith.negf %168 : vector<2x32xf32>
    %170 = math.exp %169 : vector<2x32xf32>
    %cst_79 = arith.constant 1.000000e+00 : f32
    %171 = vector.broadcast %cst_79 : f32 to vector<2x32xf32>
    %172 = arith.addf %171, %170 : vector<2x32xf32>
    %173 = arith.divf %171, %172 : vector<2x32xf32>
    %174 = arith.mulf %165, %149 : vector<2x32xf32>
    %175 = arith.mulf %159, %167 : vector<2x32xf32>
    %176 = arith.addf %174, %175 : vector<2x32xf32>
    %177 = math.tanh %176 : vector<2x32xf32>
    %178 = arith.mulf %173, %177 : vector<2x32xf32>
    %c0_80 = arith.constant 0 : index
    %c0_81 = arith.constant 0 : index
    %179 = vector.load %arg9[%c0_80, %c0_81] : memref<2x32xf32, #tpu.memory_space<vmem>>, vector<2x32xf32>
    tpu.vector_store %arg9[%c0_80, %c0_81], %178 {strides = array<i32>} : memref<2x32xf32, #tpu.memory_space<vmem>>, vector<2x32xf32>,
    %c0_82 = arith.constant 0 : index
    %c0_83 = arith.constant 0 : index
    %180 = vector.load %arg10[%c0_82, %c0_83] : memref<2x32xf32, #tpu.memory_space<vmem>>, vector<2x32xf32>
    tpu.vector_store %arg10[%c0_82, %c0_83], %176 {strides = array<i32>} : memref<2x32xf32, #tpu.memory_space<vmem>>, vector<2x32xf32>,
    %c0_84 = arith.constant 0 : index
    %c4_85 = arith.constant 4 : index
    %c0_86 = arith.constant 0 : index
    %181 = vector.load %arg6[%c0_84, %c4_85, %c0_86] : memref<2x8x32xf32, #tpu.memory_space<vmem>>, vector<2x1x32xf32>
    %182 = vector.shape_cast %181 : vector<2x1x32xf32> to vector<2x32xf32>
    %183 = vector.shape_cast %178 : vector<2x32xf32> to vector<2x1x32xf32>
    tpu.vector_store %arg6[%c0_84, %c4_85, %c0_86], %183 {strides = array<i32>} : memref<2x8x32xf32, #tpu.memory_space<vmem>>, vector<2x1x32xf32>,
    %c0_87 = arith.constant 0 : index
    %c0_88 = arith.constant 0 : index
    %184 = vector.load %arg9[%c0_87, %c0_88] : memref<2x32xf32, #tpu.memory_space<vmem>>, vector<2x32xf32>
    %c0_89 = arith.constant 0 : index
    %c0_90 = arith.constant 0 : index
    %185 = vector.load %arg10[%c0_89, %c0_90] : memref<2x32xf32, #tpu.memory_space<vmem>>, vector<2x32xf32>
    %c0_91 = arith.constant 0 : index
    %c5 = arith.constant 5 : index
    %c0_92 = arith.constant 0 : index
    %186 = vector.load %arg2[%c0_91, %c5, %c0_92] : memref<2x8x128xf32, #tpu.memory_space<vmem>>, vector<2x1x128xf32>
    %187 = vector.shape_cast %186 : vector<2x1x128xf32> to vector<2x128xf32>
    %cst_93 = arith.constant dense<0.000000e+00> : vector<2x128xf32>
    %188 = tpu.matmul %184, %3, %cst_93 {dimension_numbers = #tpu.dot_dimension_numbers<[1], [0], [0], [1], [0, 0, 1, 1], [], []>} : vector<2x32xf32>, vector<32x128xf32>, vector<2x128xf32> -> vector<2x128xf32>
    %189 = arith.addf %187, %188 : vector<2x128xf32>
    %190 = vector.extract_strided_slice %189 {offsets = [0, 0], sizes = [2, 32], strides = [1, 1]} : vector<2x128xf32> to vector<2x32xf32>
    %191 = arith.negf %190 : vector<2x32xf32>
    %192 = math.exp %191 : vector<2x32xf32>
    %cst_94 = arith.constant 1.000000e+00 : f32
    %193 = vector.broadcast %cst_94 : f32 to vector<2x32xf32>
    %194 = arith.addf %193, %192 : vector<2x32xf32>
    %195 = arith.divf %193, %194 : vector<2x32xf32>
    %196 = vector.extract_strided_slice %189 {offsets = [0, 32], sizes = [2, 32], strides = [1, 1]} : vector<2x128xf32> to vector<2x32xf32>
    %197 = arith.negf %196 : vector<2x32xf32>
    %198 = math.exp %197 : vector<2x32xf32>
    %cst_95 = arith.constant 1.000000e+00 : f32
    %199 = vector.broadcast %cst_95 : f32 to vector<2x32xf32>
    %200 = arith.addf %199, %198 : vector<2x32xf32>
    %201 = arith.divf %199, %200 : vector<2x32xf32>
    %202 = vector.extract_strided_slice %189 {offsets = [0, 64], sizes = [2, 32], strides = [1, 1]} : vector<2x128xf32> to vector<2x32xf32>
    %203 = math.tanh %202 : vector<2x32xf32>
    %204 = vector.extract_strided_slice %189 {offsets = [0, 96], sizes = [2, 32], strides = [1, 1]} : vector<2x128xf32> to vector<2x32xf32>
    %205 = arith.negf %204 : vector<2x32xf32>
    %206 = math.exp %205 : vector<2x32xf32>
    %cst_96 = arith.constant 1.000000e+00 : f32
    %207 = vector.broadcast %cst_96 : f32 to vector<2x32xf32>
    %208 = arith.addf %207, %206 : vector<2x32xf32>
    %209 = arith.divf %207, %208 : vector<2x32xf32>
    %210 = arith.mulf %201, %185 : vector<2x32xf32>
    %211 = arith.mulf %195, %203 : vector<2x32xf32>
    %212 = arith.addf %210, %211 : vector<2x32xf32>
    %213 = math.tanh %212 : vector<2x32xf32>
    %214 = arith.mulf %209, %213 : vector<2x32xf32>
    %c0_97 = arith.constant 0 : index
    %c0_98 = arith.constant 0 : index
    %215 = vector.load %arg9[%c0_97, %c0_98] : memref<2x32xf32, #tpu.memory_space<vmem>>, vector<2x32xf32>
    tpu.vector_store %arg9[%c0_97, %c0_98], %214 {strides = array<i32>} : memref<2x32xf32, #tpu.memory_space<vmem>>, vector<2x32xf32>,
    %c0_99 = arith.constant 0 : index
    %c0_100 = arith.constant 0 : index
    %216 = vector.load %arg10[%c0_99, %c0_100] : memref<2x32xf32, #tpu.memory_space<vmem>>, vector<2x32xf32>
    tpu.vector_store %arg10[%c0_99, %c0_100], %212 {strides = array<i32>} : memref<2x32xf32, #tpu.memory_space<vmem>>, vector<2x32xf32>,
    %c0_101 = arith.constant 0 : index
    %c5_102 = arith.constant 5 : index
    %c0_103 = arith.constant 0 : index
    %217 = vector.load %arg6[%c0_101, %c5_102, %c0_103] : memref<2x8x32xf32, #tpu.memory_space<vmem>>, vector<2x1x32xf32>
    %218 = vector.shape_cast %217 : vector<2x1x32xf32> to vector<2x32xf32>
    %219 = vector.shape_cast %214 : vector<2x32xf32> to vector<2x1x32xf32>
    tpu.vector_store %arg6[%c0_101, %c5_102, %c0_103], %219 {strides = array<i32>} : memref<2x8x32xf32, #tpu.memory_space<vmem>>, vector<2x1x32xf32>,
    %c0_104 = arith.constant 0 : index
    %c0_105 = arith.constant 0 : index
    %220 = vector.load %arg9[%c0_104, %c0_105] : memref<2x32xf32, #tpu.memory_space<vmem>>, vector<2x32xf32>
    %c0_106 = arith.constant 0 : index
    %c0_107 = arith.constant 0 : index
    %221 = vector.load %arg10[%c0_106, %c0_107] : memref<2x32xf32, #tpu.memory_space<vmem>>, vector<2x32xf32>
    %c0_108 = arith.constant 0 : index
    %c6 = arith.constant 6 : index
    %c0_109 = arith.constant 0 : index
    %222 = vector.load %arg2[%c0_108, %c6, %c0_109] : memref<2x8x128xf32, #tpu.memory_space<vmem>>, vector<2x1x128xf32>
    %223 = vector.shape_cast %222 : vector<2x1x128xf32> to vector<2x128xf32>
    %cst_110 = arith.constant dense<0.000000e+00> : vector<2x128xf32>
    %224 = tpu.matmul %220, %3, %cst_110 {dimension_numbers = #tpu.dot_dimension_numbers<[1], [0], [0], [1], [0, 0, 1, 1], [], []>} : vector<2x32xf32>, vector<32x128xf32>, vector<2x128xf32> -> vector<2x128xf32>
    %225 = arith.addf %223, %224 : vector<2x128xf32>
    %226 = vector.extract_strided_slice %225 {offsets = [0, 0], sizes = [2, 32], strides = [1, 1]} : vector<2x128xf32> to vector<2x32xf32>
    %227 = arith.negf %226 : vector<2x32xf32>
    %228 = math.exp %227 : vector<2x32xf32>
    %cst_111 = arith.constant 1.000000e+00 : f32
    %229 = vector.broadcast %cst_111 : f32 to vector<2x32xf32>
    %230 = arith.addf %229, %228 : vector<2x32xf32>
    %231 = arith.divf %229, %230 : vector<2x32xf32>
    %232 = vector.extract_strided_slice %225 {offsets = [0, 32], sizes = [2, 32], strides = [1, 1]} : vector<2x128xf32> to vector<2x32xf32>
    %233 = arith.negf %232 : vector<2x32xf32>
    %234 = math.exp %233 : vector<2x32xf32>
    %cst_112 = arith.constant 1.000000e+00 : f32
    %235 = vector.broadcast %cst_112 : f32 to vector<2x32xf32>
    %236 = arith.addf %235, %234 : vector<2x32xf32>
    %237 = arith.divf %235, %236 : vector<2x32xf32>
    %238 = vector.extract_strided_slice %225 {offsets = [0, 64], sizes = [2, 32], strides = [1, 1]} : vector<2x128xf32> to vector<2x32xf32>
    %239 = math.tanh %238 : vector<2x32xf32>
    %240 = vector.extract_strided_slice %225 {offsets = [0, 96], sizes = [2, 32], strides = [1, 1]} : vector<2x128xf32> to vector<2x32xf32>
    %241 = arith.negf %240 : vector<2x32xf32>
    %242 = math.exp %241 : vector<2x32xf32>
    %cst_113 = arith.constant 1.000000e+00 : f32
    %243 = vector.broadcast %cst_113 : f32 to vector<2x32xf32>
    %244 = arith.addf %243, %242 : vector<2x32xf32>
    %245 = arith.divf %243, %244 : vector<2x32xf32>
    %246 = arith.mulf %237, %221 : vector<2x32xf32>
    %247 = arith.mulf %231, %239 : vector<2x32xf32>
    %248 = arith.addf %246, %247 : vector<2x32xf32>
    %249 = math.tanh %248 : vector<2x32xf32>
    %250 = arith.mulf %245, %249 : vector<2x32xf32>
    %c0_114 = arith.constant 0 : index
    %c0_115 = arith.constant 0 : index
    %251 = vector.load %arg9[%c0_114, %c0_115] : memref<2x32xf32, #tpu.memory_space<vmem>>, vector<2x32xf32>
    tpu.vector_store %arg9[%c0_114, %c0_115], %250 {strides = array<i32>} : memref<2x32xf32, #tpu.memory_space<vmem>>, vector<2x32xf32>,
    %c0_116 = arith.constant 0 : index
    %c0_117 = arith.constant 0 : index
    %252 = vector.load %arg10[%c0_116, %c0_117] : memref<2x32xf32, #tpu.memory_space<vmem>>, vector<2x32xf32>
    tpu.vector_store %arg10[%c0_116, %c0_117], %248 {strides = array<i32>} : memref<2x32xf32, #tpu.memory_space<vmem>>, vector<2x32xf32>,
    %c0_118 = arith.constant 0 : index
    %c6_119 = arith.constant 6 : index
    %c0_120 = arith.constant 0 : index
    %253 = vector.load %arg6[%c0_118, %c6_119, %c0_120] : memref<2x8x32xf32, #tpu.memory_space<vmem>>, vector<2x1x32xf32>
    %254 = vector.shape_cast %253 : vector<2x1x32xf32> to vector<2x32xf32>
    %255 = vector.shape_cast %250 : vector<2x32xf32> to vector<2x1x32xf32>
    tpu.vector_store %arg6[%c0_118, %c6_119, %c0_120], %255 {strides = array<i32>} : memref<2x8x32xf32, #tpu.memory_space<vmem>>, vector<2x1x32xf32>,
    %c0_121 = arith.constant 0 : index
    %c0_122 = arith.constant 0 : index
    %256 = vector.load %arg9[%c0_121, %c0_122] : memref<2x32xf32, #tpu.memory_space<vmem>>, vector<2x32xf32>
    %c0_123 = arith.constant 0 : index
    %c0_124 = arith.constant 0 : index
    %257 = vector.load %arg10[%c0_123, %c0_124] : memref<2x32xf32, #tpu.memory_space<vmem>>, vector<2x32xf32>
    %c0_125 = arith.constant 0 : index
    %c7 = arith.constant 7 : index
    %c0_126 = arith.constant 0 : index
    %258 = vector.load %arg2[%c0_125, %c7, %c0_126] : memref<2x8x128xf32, #tpu.memory_space<vmem>>, vector<2x1x128xf32>
    %259 = vector.shape_cast %258 : vector<2x1x128xf32> to vector<2x128xf32>
    %cst_127 = arith.constant dense<0.000000e+00> : vector<2x128xf32>
    %260 = tpu.matmul %256, %3, %cst_127 {dimension_numbers = #tpu.dot_dimension_numbers<[1], [0], [0], [1], [0, 0, 1, 1], [], []>} : vector<2x32xf32>, vector<32x128xf32>, vector<2x128xf32> -> vector<2x128xf32>
    %261 = arith.addf %259, %260 : vector<2x128xf32>
    %262 = vector.extract_strided_slice %261 {offsets = [0, 0], sizes = [2, 32], strides = [1, 1]} : vector<2x128xf32> to vector<2x32xf32>
    %263 = arith.negf %262 : vector<2x32xf32>
    %264 = math.exp %263 : vector<2x32xf32>
    %cst_128 = arith.constant 1.000000e+00 : f32
    %265 = vector.broadcast %cst_128 : f32 to vector<2x32xf32>
    %266 = arith.addf %265, %264 : vector<2x32xf32>
    %267 = arith.divf %265, %266 : vector<2x32xf32>
    %268 = vector.extract_strided_slice %261 {offsets = [0, 32], sizes = [2, 32], strides = [1, 1]} : vector<2x128xf32> to vector<2x32xf32>
    %269 = arith.negf %268 : vector<2x32xf32>
    %270 = math.exp %269 : vector<2x32xf32>
    %cst_129 = arith.constant 1.000000e+00 : f32
    %271 = vector.broadcast %cst_129 : f32 to vector<2x32xf32>
    %272 = arith.addf %271, %270 : vector<2x32xf32>
    %273 = arith.divf %271, %272 : vector<2x32xf32>
    %274 = vector.extract_strided_slice %261 {offsets = [0, 64], sizes = [2, 32], strides = [1, 1]} : vector<2x128xf32> to vector<2x32xf32>
    %275 = math.tanh %274 : vector<2x32xf32>
    %276 = vector.extract_strided_slice %261 {offsets = [0, 96], sizes = [2, 32], strides = [1, 1]} : vector<2x128xf32> to vector<2x32xf32>
    %277 = arith.negf %276 : vector<2x32xf32>
    %278 = math.exp %277 : vector<2x32xf32>
    %cst_130 = arith.constant 1.000000e+00 : f32
    %279 = vector.broadcast %cst_130 : f32 to vector<2x32xf32>
    %280 = arith.addf %279, %278 : vector<2x32xf32>
    %281 = arith.divf %279, %280 : vector<2x32xf32>
    %282 = arith.mulf %273, %257 : vector<2x32xf32>
    %283 = arith.mulf %267, %275 : vector<2x32xf32>
    %284 = arith.addf %282, %283 : vector<2x32xf32>
    %285 = math.tanh %284 : vector<2x32xf32>
    %286 = arith.mulf %281, %285 : vector<2x32xf32>
    %c0_131 = arith.constant 0 : index
    %c0_132 = arith.constant 0 : index
    %287 = vector.load %arg9[%c0_131, %c0_132] : memref<2x32xf32, #tpu.memory_space<vmem>>, vector<2x32xf32>
    tpu.vector_store %arg9[%c0_131, %c0_132], %286 {strides = array<i32>} : memref<2x32xf32, #tpu.memory_space<vmem>>, vector<2x32xf32>,
    %c0_133 = arith.constant 0 : index
    %c0_134 = arith.constant 0 : index
    %288 = vector.load %arg10[%c0_133, %c0_134] : memref<2x32xf32, #tpu.memory_space<vmem>>, vector<2x32xf32>
    tpu.vector_store %arg10[%c0_133, %c0_134], %284 {strides = array<i32>} : memref<2x32xf32, #tpu.memory_space<vmem>>, vector<2x32xf32>,
    %c0_135 = arith.constant 0 : index
    %c7_136 = arith.constant 7 : index
    %c0_137 = arith.constant 0 : index
    %289 = vector.load %arg6[%c0_135, %c7_136, %c0_137] : memref<2x8x32xf32, #tpu.memory_space<vmem>>, vector<2x1x32xf32>
    %290 = vector.shape_cast %289 : vector<2x1x32xf32> to vector<2x32xf32>
    %291 = vector.shape_cast %286 : vector<2x32xf32> to vector<2x1x32xf32>
    tpu.vector_store %arg6[%c0_135, %c7_136, %c0_137], %291 {strides = array<i32>} : memref<2x8x32xf32, #tpu.memory_space<vmem>>, vector<2x1x32xf32>,
    %c0_i32_138 = arith.constant 0 : i32
    %292 = arith.cmpi eq, %arg1, %c0_i32_138 : i32
    %293 = arith.extui %292 : i1 to i32
    %c0_i32_139 = arith.constant 0 : i32
    %294 = arith.cmpi ne, %293, %c0_i32_139 : i32
    scf.if %294 {
      %c0_140 = arith.constant 0 : index
      %c0_141 = arith.constant 0 : index
      %295 = vector.load %arg9[%c0_140, %c0_141] : memref<2x32xf32, #tpu.memory_space<vmem>>, vector<2x32xf32>
      %c0_142 = arith.constant 0 : index
      %c0_143 = arith.constant 0 : index
      %296 = vector.load %arg7[%c0_142, %c0_143] : memref<2x32xf32, #tpu.memory_space<vmem>>, vector<2x32xf32>
      tpu.vector_store %arg7[%c0_142, %c0_143], %295 {strides = array<i32>} : memref<2x32xf32, #tpu.memory_space<vmem>>, vector<2x32xf32>,
      %c0_144 = arith.constant 0 : index
      %c0_145 = arith.constant 0 : index
      %297 = vector.load %arg10[%c0_144, %c0_145] : memref<2x32xf32, #tpu.memory_space<vmem>>, vector<2x32xf32>
      %c0_146 = arith.constant 0 : index
      %c0_147 = arith.constant 0 : index
      %298 = vector.load %arg8[%c0_146, %c0_147] : memref<2x32xf32, #tpu.memory_space<vmem>>, vector<2x32xf32>
      tpu.vector_store %arg8[%c0_146, %c0_147], %297 {strides = array<i32>} : memref<2x32xf32, #tpu.memory_space<vmem>>, vector<2x32xf32>,
    } else {
    }
    return
  }
  func.func @transform_0(%arg0: i32, %arg1: i32) -> (i32, i32, i32) {
    %c0_i32 = arith.constant 0 : i32
    %c0_i32_0 = arith.constant 0 : i32
    return %arg0, %arg1, %c0_i32 : i32, i32, i32
  }
  func.func @transform_1(%arg0: i32, %arg1: i32) -> (i32, i32) {
    %c0_i32 = arith.constant 0 : i32
    %c0_i32_0 = arith.constant 0 : i32
    return %arg0, %c0_i32 : i32, i32
  }
  func.func @transform_2(%arg0: i32, %arg1: i32) -> (i32, i32) {
    %c0_i32 = arith.constant 0 : i32
    %c0_i32_0 = arith.constant 0 : i32
    return %arg0, %c0_i32 : i32, i32
  }
  func.func @transform_3(%arg0: i32, %arg1: i32) -> (i32, i32) {
    %c0_i32 = arith.constant 0 : i32
    %c0_i32_0 = arith.constant 0 : i32
    %c0_i32_1 = arith.constant 0 : i32
    return %c0_i32, %c0_i32_0 : i32, i32
  }
  func.func @transform_4(%arg0: i32, %arg1: i32) -> (i32, i32, i32) {
    %c0_i32 = arith.constant 0 : i32
    %c0_i32_0 = arith.constant 0 : i32
    return %arg0, %arg1, %c0_i32 : i32, i32, i32
  }
  func.func @transform_5(%arg0: i32, %arg1: i32) -> (i32, i32) {
    %c0_i32 = arith.constant 0 : i32
    %c0_i32_0 = arith.constant 0 : i32
    return %arg0, %c0_i32 : i32, i32
  }
  func.func @transform_6(%arg0: i32, %arg1: i32) -> (i32, i32) {
    %c0_i32 = arith.constant 0 : i32
    %c0_i32_0 = arith.constant 0 : i32
    return %arg0, %c0_i32 : i32, i32
  }
}

module attributes {stable_mosaic.version = 11 : i64} {
  func.func @_mlp_head_kernel(%arg0: i32, %arg1: memref<16x32xf32, #tpu.memory_space<vmem>>, %arg2: memref<32x64xf32, #tpu.memory_space<vmem>>, %arg3: memref<1x64xf32, #tpu.memory_space<vmem>>, %arg4: memref<64x8xf32, #tpu.memory_space<vmem>>, %arg5: memref<1x8xf32, #tpu.memory_space<vmem>>, %arg6: memref<16x8xf32, #tpu.memory_space<vmem>>) attributes {dimension_semantics = [#tpu.dimension_semantics<parallel>], iteration_bounds = array<i64: 1>, scalar_prefetch = 0 : i64, scratch_operands = 0 : i64, tpu.core_type = #tpu.core_type<tc>, window_params = [{transform_indices = @transform_0, window_bounds = array<i64: 16, 32>}, {pipeline_mode = #tpu.pipeline_mode<synchronous>, transform_indices = @transform_1, window_bounds = array<i64: 32, 64>}, {pipeline_mode = #tpu.pipeline_mode<synchronous>, transform_indices = @transform_2, window_bounds = array<i64: 1, 64>}, {pipeline_mode = #tpu.pipeline_mode<synchronous>, transform_indices = @transform_3, window_bounds = array<i64: 64, 8>}, {pipeline_mode = #tpu.pipeline_mode<synchronous>, transform_indices = @transform_4, window_bounds = array<i64: 1, 8>}, {transform_indices = @transform_5, window_bounds = array<i64: 16, 8>}]} {
    %c0 = arith.constant 0 : index
    %c0_0 = arith.constant 0 : index
    %0 = vector.load %arg1[%c0, %c0_0] : memref<16x32xf32, #tpu.memory_space<vmem>>, vector<16x32xf32>
    %c0_1 = arith.constant 0 : index
    %c0_2 = arith.constant 0 : index
    %1 = vector.load %arg2[%c0_1, %c0_2] : memref<32x64xf32, #tpu.memory_space<vmem>>, vector<32x64xf32>
    %cst = arith.constant dense<0.000000e+00> : vector<16x64xf32>
    %2 = tpu.matmul %0, %1, %cst {dimension_numbers = #tpu.dot_dimension_numbers<[1], [0], [0], [1], [0, 0, 1, 1], [], []>} : vector<16x32xf32>, vector<32x64xf32>, vector<16x64xf32> -> vector<16x64xf32>
    %c0_3 = arith.constant 0 : index
    %c0_4 = arith.constant 0 : index
    %3 = vector.load %arg3[%c0_3, %c0_4] : memref<1x64xf32, #tpu.memory_space<vmem>>, vector<1x64xf32>
    %4 = vector.broadcast %3 : vector<1x64xf32> to vector<16x64xf32>
    %5 = arith.addf %2, %4 : vector<16x64xf32>
    %cst_5 = arith.constant 0.000000e+00 : f32
    %6 = vector.broadcast %cst_5 : f32 to vector<16x64xf32>
    %7 = arith.maximumf %5, %6 : vector<16x64xf32>
    %c0_6 = arith.constant 0 : index
    %c0_7 = arith.constant 0 : index
    %8 = vector.load %arg4[%c0_6, %c0_7] : memref<64x8xf32, #tpu.memory_space<vmem>>, vector<64x8xf32>
    %cst_8 = arith.constant dense<0.000000e+00> : vector<16x8xf32>
    %9 = tpu.matmul %7, %8, %cst_8 {dimension_numbers = #tpu.dot_dimension_numbers<[1], [0], [0], [1], [0, 0, 1, 1], [], []>} : vector<16x64xf32>, vector<64x8xf32>, vector<16x8xf32> -> vector<16x8xf32>
    %c0_9 = arith.constant 0 : index
    %c0_10 = arith.constant 0 : index
    %10 = vector.load %arg5[%c0_9, %c0_10] : memref<1x8xf32, #tpu.memory_space<vmem>>, vector<1x8xf32>
    %11 = vector.broadcast %10 : vector<1x8xf32> to vector<16x8xf32>
    %12 = arith.addf %9, %11 : vector<16x8xf32>
    %c0_11 = arith.constant 0 : index
    %c0_12 = arith.constant 0 : index
    %13 = vector.load %arg6[%c0_11, %c0_12] : memref<16x8xf32, #tpu.memory_space<vmem>>, vector<16x8xf32>
    tpu.vector_store %arg6[%c0_11, %c0_12], %12 {strides = array<i32>} : memref<16x8xf32, #tpu.memory_space<vmem>>, vector<16x8xf32>,
    return
  }
  func.func @transform_0(%arg0: i32) -> (i32, i32) {
    %c0_i32 = arith.constant 0 : i32
    %c0_i32_0 = arith.constant 0 : i32
    return %arg0, %c0_i32 : i32, i32
  }
  func.func @transform_1(%arg0: i32) -> (i32, i32) {
    %c0_i32 = arith.constant 0 : i32
    %c0_i32_0 = arith.constant 0 : i32
    %c0_i32_1 = arith.constant 0 : i32
    return %c0_i32, %c0_i32_0 : i32, i32
  }
  func.func @transform_2(%arg0: i32) -> (i32, i32) {
    %c0_i32 = arith.constant 0 : i32
    %c0_i32_0 = arith.constant 0 : i32
    %c0_i32_1 = arith.constant 0 : i32
    return %c0_i32, %c0_i32_0 : i32, i32
  }
  func.func @transform_3(%arg0: i32) -> (i32, i32) {
    %c0_i32 = arith.constant 0 : i32
    %c0_i32_0 = arith.constant 0 : i32
    %c0_i32_1 = arith.constant 0 : i32
    return %c0_i32, %c0_i32_0 : i32, i32
  }
  func.func @transform_4(%arg0: i32) -> (i32, i32) {
    %c0_i32 = arith.constant 0 : i32
    %c0_i32_0 = arith.constant 0 : i32
    %c0_i32_1 = arith.constant 0 : i32
    return %c0_i32, %c0_i32_0 : i32, i32
  }
  func.func @transform_5(%arg0: i32) -> (i32, i32) {
    %c0_i32 = arith.constant 0 : i32
    %c0_i32_0 = arith.constant 0 : i32
    return %arg0, %c0_i32 : i32, i32
  }
}

</mosaic_0001>

<bundles_post_ra>
// kernel: lstm2fc_forward.3
= control target key start
LH: loop header
LB: loop body
LE: loop exit
PB: predicated region body
PF: predicated region fallthrough
CT: control target
= control target key end

     0   :  { %vm25_vm0 = vcmask 130048   ;;  %s172_s1 = inlined_call_operand.vmem [shape: f32[16,128], index: 1, kind: input, shape index: {}]   ;;  %s173_s0 = inlined_call_operand.vmem [shape: f32[16,16], index: 0, kind: input, shape index: {}]   ;;  %s174_s2 = inlined_call_operand.vmem [shape: f32[1,128], index: 2, kind: input, shape index: {}]   ;;  %s175_s3 = inlined_call_operand.vmem [shape: f32[16,128], index: 3, kind: output, shape index: {}]  }
   0x1   :  { %v16_v0 = vld [vmem:[%s172_s1] sm:$0xff]  ;;  %v17_v1 = vld [vmem:[%s172_s1 + $0x8] sm:$0xff] }
   0x2   :  { %v14_v2 = vld [vmem:[%s173_s0] sm:$0xff]  ;;  %v127_v3 = vpack.c.bf16 %v17_v1, %v16_v0  ;;  %v15_v4 = vld [vmem:[%s173_s0 + $0x8] sm:$0xff] }
   0x3   :  { %124 = vmatprep.mubr.msk.f32.mxu0 %vm25_vm0, %v14_v2  ;;  %v113_v5 = vld [vmem:[%s174_s2] ss:$0 sm:$0xff] }
   0x4   :  { %128 = vmatprep.subr.bf16.mxu0 %v127_v3 }
   0x5   :  { %130 = vmatpush3.bf16.msra.mxu0 %v127_v3 }
   0x8   :  { %125 = vmatmul.mubr.msk.f32.vlgmr.msra.gmra.mrb[0].mxu0 %vm25_vm0, %v15_v4 }
  0xdb   :  { %v126_v6 = vpop.f32.mrb[0].mxu0 }
  0xdc   :  { %v104_v7 = vadd.f32 %v126_v6, %v113_v5  ;;  %v98_v8 = vpop.f32.mrb[1].mxu0 }
  0xdd   :  { %v99_v9 = vadd.f32 %v113_v5, %v98_v8 }
  0xde   :  { %108 = vst [vmem:[%s175_s3 + $0x8] sm:$0xff] %v104_v7 }
  0xdf   :  { %107 = vst [vmem:[%s175_s3] sm:$0xff] %v99_v9 }

// kernel: lstm2fc_forward.5
= control target key start
LH: loop header
LB: loop body
LE: loop exit
PB: predicated region body
PF: predicated region fallthrough
CT: control target
= control target key end

     0   :  { %vm34_vm0 = vcmask 261120   ;;  %s432_s0 = inlined_call_operand.vmem [shape: f32[16,32], index: 0, kind: input, shape index: {}]   ;;  %s433_s1 = inlined_call_operand.vmem [shape: f32[32,64], index: 1, kind: input, shape index: {}]   ;;  %s434_s2 = inlined_call_operand.vmem [shape: f32[1,64], index: 2, kind: input, shape index: {}]   ;;  %s435_s3 = inlined_call_operand.vmem [shape: f32[64,8], index: 3, kind: input, shape index: {}]   ;;  %s436_s4 = inlined_call_operand.vmem [shape: f32[1,8], index: 4, kind: input, shape index: {}]   ;;  %s437_s5 = inlined_call_operand.hbm [shape: f32[16,8], index: 5, kind: output, shape index: {}]  }
   0x1   :  { %v23_v0 = vld [vmem:[%s433_s1] sm:$0xff]  ;;  %v24_v1 = vld [vmem:[%s433_s1 + $0x8] sm:$0xff]  ;;  %v25_v2 = vld [vmem:[%s433_s1 + $0x10] sm:$0xff] }
   0x2   :  { %v286_v3 = vpack.c.bf16 %v24_v1, %v23_v0  ;;  %v26_v4 = vld [vmem:[%s433_s1 + $0x18] sm:$0xff]  ;;  %v21_v5 = vld [vmem:[%s432_s0] sm:$0xff]  ;;  %v119_v8 = vld [vmem:[%s435_s3 + $0x8] sm:$0xff] }
   0x3   :  { %v290_v6 = vpack.c.bf16 %v26_v4, %v25_v2  ;;  %264 = vmatprep.mubr.msk.f32.mxu0 %vm34_vm0, %v21_v5  ;;  %v118_v7 = vld [vmem:[%s435_s3] sm:$0xff]  ;;  %v120_v9 = vld [vmem:[%s435_s3 + $0x10] sm:$0xff]  ;;  %v121_v11 = vld [vmem:[%s435_s3 + $0x18] sm:$0xff] }
   0x4   :  { %287 = vmatprep.subr.bf16.mxu0 %v286_v3  ;;  %v294_v10 = vpack.c.bf16 %v119_v8, %v118_v7  ;;  %v298_v12 = vpack.c.bf16 %v121_v11, %v120_v9  ;;  %v122_v13 = vld [vmem:[%s435_s3 + $0x20] sm:$0xff]  ;;  %v123_v14 = vld [vmem:[%s435_s3 + $0x28] sm:$0xff] }
   0x5   :  { %289 = vmatpush3.bf16.msra.mxu0 %v286_v3 }
   0x6   :  { %10 = vsyncpa [#allocation3], 0  ;;  %291 = vmatprep.subr.bf16.mxu0 %v290_v6  ;;  %295 = vmatprep.subr.bf16.mxu1 %v294_v10  ;;  %v302_v15 = vpack.c.bf16 %v123_v14, %v122_v13  ;;  %v22_v16 = vld [vmem:[%s432_s0 + $0x8] sm:$0xff]  ;;  %v124_v17 = vld [vmem:[%s435_s3 + $0x30] sm:$0xff]  ;;  %vm133_vm1 = vcmask 523264   ;;  %vm215_vm2 = vcmask 64512  }
   0x7   :  { %297 = vmatpush3.bf16.msra.mxu1 %v294_v10  ;;  %v125_v18 = vld [vmem:[%s435_s3 + $0x38] sm:$0xff]  ;;  %v234_v20 = vld [vmem:[%s434_s2] ss:$0 sm:$0xff]  ;;  %s337_s3 = smov [#allocation2]  }
   0x8   :  { %299 = vmatprep.subr.bf16.mxu1 %v298_v12  ;;  %v306_v19 = vpack.c.bf16 %v125_v18, %v124_v17  ;;  %v237_v27 = vld [vmem:[%s436_s4] ss:$0 sm:$0xff]  ;;  %s223_s23 = sshll.u32 %s337_s3, 4  ;;  %s224_s23 = int_to_ptr.vmem [resolvable:$true] %s223_s23 }
   0x9   :  { %293 = vmatpush3.bf16.msra.mxu0 %v290_v6  ;;  %s313_s2 = scalar_lea.vmem %s224_s23, 256  ;;  %p318_p1 = scmp.lt.s32.totalorder %s224_s23, %s224_s23 }
   0xa   :  { %p314_p0 = scmp.ne.s32.totalorder %s224_s23, %s313_s2  ;;  %p319_p2 = scmp.lt.s32.totalorder %s313_s2, %s313_s2 }
   0xb   :  { %301 = vmatpush3.bf16.msra.mxu1 %v298_v12 }
   0xc   :  { %265 = vmatmul.mubr.msk.f32.vlgmr.msra.gmra.mrb[0].mxu0 %vm34_vm0, %v22_v16  ;;  %303 = vmatprep.subr.bf16.mxu1 %v302_v15  ;;  %p320_p3 = por %p319_p2, %p318_p1 }
   0xe   :  { %p321_p4 = pnand %p320_p3, %p314_p0 }
   0xf   :  { %305 = vmatpush3.bf16.msra.mxu1 %v302_v15 }
  0x10   :  { %307 = vmatprep.subr.bf16.mxu1 %v306_v19 }
  0x13   :  { %309 = vmatpush3.bf16.msra.mxu1 %v306_v19 }
  0xdf   :  { %v266_v21 = vpop.f32.mrb[0].mxu0 }
  0xe0   :  { %v113_v22 = vadd.f32 %v266_v21, %v234_v20  ;;  %v107_v23 = vpop.f32.mrb[1].mxu0 }
  0xe1   :  { %v108_v24 = vadd.f32 %v234_v20, %v107_v23 }
  0xe2   :  { %v117_v26 = vmax.f32 %v113_v22, 0.0 }
  0xe3   :  { %v116_v25 = vmax.f32 %v108_v24, 0.0 }
  0xe5   :  { %283 = vmatprep.mubr.msk.f32.mxu1 %vm133_vm1, %v116_v25 }
  0xe6   :  { %284 = vmatmul.mubr.msk.f32.vlgmr.msra.gmra.mrb[0].mxu1 %vm133_vm1, %v117_v26 }
 0x1b9   :  { %v285_v28 = vpop.f32.mrb[0].mxu1 }
 0x1ba   :  { %v212_v29 = vadd.f32 %v285_v28, %v237_v27  ;;  %v206_v30 = vpop.f32.mrb[1].mxu1 }
 0x1bb   :  { %v207_v31 = vadd.f32 %v237_v27, %v206_v30 }
 0x1bc   :  { %217 = vst.msk [vmem:[#allocation2 + $0x8] sm:$0xff] %vm215_vm2, %v212_v29 }
 0x1bd   :  { %216 = vst.msk [vmem:[#allocation2] sm:$0xff] %vm215_vm2, %v207_v31 }
 0x1be   :  { %324 = shalt.err (!%p321_p4)
}
 0x1bf   :  { %s325_s4 = scalar_lea.hbm %s437_s5, 256 }
 0x1c0   :  { %p326_p5 = scmp.ne.s32.totalorder %s437_s5, %s325_s4  ;;  %p329_p6 = scmp.lt.u32.totalorder %s325_s4, %s437_s5 }
 0x1c2   :  { %p331_p7 = pnand %p329_p6, %p326_p5 }
 0x1c4   :  { %334 = shalt.err (!%p331_p7)
}
 0x1c5   :  { %s338_s30 = smov 128   ;;  %s339_s6 = smov 8  }
 0x1c6   :  { %229 = dma.vmem_to_hbm [thread:$0]  %s224_s23, 256, %s437_s5, [#allocation3], %s338_s30, %s338_s30, %s339_s6  }
 0x1c7   :  { %335 = dma.done.wait [#allocation3], 256  }
 0x1c8   :  { %336 = vsyncadd [#allocation3], 4294967040 }
 0x1c9   :  { %233 = vsyncpa [#allocation3], 1 }

// kernel: lstm2fc_forward.4
= control target key start
LH: loop header
LB: loop body
LE: loop exit
PB: predicated region body
PF: predicated region fallthrough
CT: control target
= control target key end

     0   :  { %12 = vsyncpa [#allocation5], 0  ;;  %v1766_v3 = vmov 0.0|0.0   ;;  %vm1767_vm0 = vmmov 0   ;;  %v1768_v6 = vmov 0.0   ;;  %vm27_vm1 = vcmask 254976   ;;  %s2211_s0 = inlined_call_operand.vmem [shape: f32[2,8,128], index: 0, kind: input, shape index: {}]   ;;  %s2212_s1 = inlined_call_operand.vmem [shape: f32[2,32], index: 1, kind: input, shape index: {}]   ;;  %s2213_s2 = inlined_call_operand.vmem [shape: f32[2,32], index: 2, kind: input, shape index: {}]   ;;  %s2214_s3 = inlined_call_operand.vmem [shape: f32[32,128], index: 3, kind: input, shape index: {}]   ;;  %s2215_s4 = inlined_call_operand.vmem [shape: f32[2,8,32], index: 4, kind: output, shape index: {0}]   ;;  %s2216_s5 = inlined_call_operand.hbm [shape: f32[2,32], index: 5, kind: output, shape index: {1}]   ;;  %s2217_s6 = inlined_call_operand.hbm [shape: f32[2,32], index: 6, kind: output, shape index: {2}]  }
   0x1   :  { %v31_v0 = vld [vmem:[%s2214_s3] sm:$0xff]  ;;  %v32_v1 = vld [vmem:[%s2214_s3 + $0x8] sm:$0xff]  ;;  %v33_v2 = vld [vmem:[%s2214_s3 + $0x10] sm:$0xff]  ;;  %1534 = vmatprep.subr.bf16.mxu0 %v1766_v3  ;;  %1454 = vmatprep.mubr.msk.f32.mxu0 %vm1767_vm0, %v1768_v6 }
   0x2   :  { %v1819_v4 = vpack.c.bf16 %v32_v1, %v31_v0  ;;  %v34_v5 = vld [vmem:[%s2214_s3 + $0x18] sm:$0xff]  ;;  %v26_v7 = vld [vmem:[%s2212_s1] sm:$0x3]  ;;  %1540 = vmatprep.subr.bf16.mxu1 %v1766_v3  ;;  %1465 = vmatprep.mubr.msk.f32.mxu1 %vm1767_vm0, %v1768_v6 }
   0x3   :  { %28 = vst.msk [vmem:[#allocation2] sm:$0x3] %vm27_vm1, %v26_v7  ;;  %v29_v8 = vld [vmem:[%s2213_s2] sm:$0x3]  ;;  %v1837_v9 = vpack.c.bf16 %v34_v5, %v33_v2 }
   0x4   :  { %1536 = vmatpush3.bf16.msra.mxu0 %v1819_v4  ;;  %30 = vst.msk [vmem:[#allocation3] sm:$0x3] %vm27_vm1, %v29_v8  ;;  %1542 = vmatpush3.bf16.msra.mxu1 %v1819_v4 }
   0x5   :  { %13 = vsyncpa [#allocation7], 0  ;;  %1537 = vmatprep.subr.bf16.mxu0 %v1766_v3  ;;  %1543 = vmatprep.subr.bf16.mxu1 %v1766_v3  ;;  %vm39_vm2 = vcmask 261120   ;;  %s1769_s1 = smov 32   ;;  %v38_v13 = vld [vmem:[%s2211_s0 + $0x8] sm:$0x1] }
   0x6   :  { %v37_v17 = vld [vmem:[%s2211_s0] sm:$0x1]  ;;  %s1770_s11 = smov 64   ;;  %vm178_vm3 = vcmask 1041409   ;;  %s1771_s12 = smov 96   ;;  %vm199_vm4 = vcmask 253952  }
   0x7   :  { %v204_v55 = vld [vmem:[%s2211_s0 + $0x1] sm:$0x1]  ;;  %v205_v56 = vld [vmem:[%s2211_s0 + $0x9] sm:$0x1] }
   0x8   :  { %1539 = vmatpush3.bf16.msra.mxu0 %v1837_v9  ;;  %1545 = vmatpush3.bf16.msra.mxu1 %v1837_v9 }
   0x9   :  { %1546 = vmatprep.subr.bf16.mxu0 %v1766_v3  ;;  %1552 = vmatprep.subr.bf16.mxu1 %v1766_v3 }
   0xa   :  { %v35_v10 = vld [vmem:[#allocation2] sm:$0x3] }
   0xb   :  { %1455 = vmatmul.mubr.msk.f32.vlgmr.msra.gmra.mrb[0].mxu0 %vm39_vm2, %v35_v10  ;;  %v36_v11 = vld [vmem:[#allocation3] sm:$0x3] }
   0xc   :  { %v134_v12 = vrot.slane %v36_v11, 1  ;;  %1548 = vmatpush3.bf16.msra.mxu0 %v1819_v4  ;;  %1476 = vmatprep.mubr.msk.f32.mxu0 %vm1767_vm0, %v1768_v6 }
   0xd   :  { %1549 = vmatprep.subr.bf16.mxu0 %v1766_v3 }
   0xe   :  { %137 = vrot.lane.b32.xlu1 %v134_v12, %s1769_s1 }
  0x10   :  { %1551 = vmatpush3.bf16.msra.mxu0 %v1837_v9 }
  0x11   :  { %1558 = vmatprep.subr.bf16.mxu0 %v1766_v3 }
  0x12   :  { %135 = vrot.lane.b32.xlu1 %v36_v11, %s1769_s1 }
  0x80   :  { %v138_v34 = vpop.permute.xlu1 %137 }
  0x84   :  { %v136_v36 = vpop.permute.xlu1 %135 }
  0xde   :  { %v109_v14 = vpop.f32.mrb[0].mxu0 }
  0xdf   :  { %v114_v15 = vrot.slane %v109_v14, 1  ;;  %v1456_v16 = vpop.f32.mrb[1].mxu0  ;;  %v117_v19 = vadd.f32 %v109_v14, %v37_v17 }
  0xe1   :  { %v118_v18 = vadd.f32 %v114_v15, %v38_v13  ;;  %v1383_v23 = vmul.f32 -1.442695, %v117_v19 }
  0xe3   :  { %1590 = vtanh.f32 %v118_v18  ;;  %v1384_v22 = vmul.f32 -1.442695, %v118_v18 }
  0xe4   :  { %1592 = vtanh.f32 %v117_v19 }
  0xe5   :  { %1594 = vpow2.f32 %v1384_v22 }
  0xe6   :  { %1596 = vpow2.f32 %v1383_v23 }
  0xed   :  { %v1591_v20 = vpop.eup %1590 }
  0xee   :  { %147 = vrot.lane.b32.xlu0 %v1591_v20, %s1770_s11  ;;  %v1593_v21 = vpop.eup %1592 }
  0xef   :  { %v1595_v24 = vpop.eup %1594 }
  0xf0   :  { %v126_v25 = vadd.f32 1.0, %v1595_v24  ;;  %v1597_v26 = vpop.eup %1596 }
  0xf1   :  { %v125_v27 = vadd.f32 1.0, %v1597_v26 }
  0xf2   :  { %145 = vrot.lane.b32.xlu0 %v1593_v21, %s1770_s11  ;;  %1598 = vrcp.f32 %v126_v25 }
  0xf3   :  { %1600 = vrcp.f32 %v125_v27 }
  0xfc   :  { %v1599_v28 = vpop.eup %1598 }
  0xfd   :  { %v1601_v31 = vpop.eup %1600  ;;  %v142_v35 = vmul.f32 %v1599_v28, %v138_v34 }
  0xfe   :  { %v141_v39 = vmul.f32 %v1601_v31, %v136_v36 }
 0x160   :  { %v148_v29 = vpop.permute.xlu0 %147 }
 0x161   :  { %v152_v30 = vmul.f32 %v1599_v28, %v148_v29 }
 0x163   :  { %157 = vrot.lane.b32.xlu0 %v152_v30, %s1769_s1 }
 0x164   :  { %v146_v32 = vpop.permute.xlu0 %145 }
 0x165   :  { %v151_v33 = vmul.f32 %v1601_v31, %v146_v32 }
 0x167   :  { %155 = vrot.lane.b32.xlu1 %v151_v33, %s1769_s1 }
 0x1d5   :  { %v158_v37 = vpop.permute.xlu0 %157 }
 0x1d6   :  { %v162_v38 = vadd.f32 %v158_v37, %v142_v35 }
 0x1d8   :  { %1602 = vtanh.f32 %v162_v38  ;;  %v187_v44 = vrot.slane %v162_v38, 7 }
 0x1d9   :  { %v156_v40 = vpop.permute.xlu1 %155 }
 0x1da   :  { %v161_v41 = vadd.f32 %v156_v40, %v141_v39  ;;  %v367_v39 = vld [vmem:[%s2211_s0 + $0x2] sm:$0x1]  ;;  %v368_v40 = vld [vmem:[%s2211_s0 + $0xa] sm:$0x1] }
 0x1dc   :  { %1604 = vtanh.f32 %v161_v41  ;;  %v188_v45 = vsel %vm178_vm3, %v187_v44, %v161_v41 }
 0x1e2   :  { %v1603_v42 = vpop.eup %1602 }
 0x1e3   :  { %169 = vrot.lane.b32.xlu0 %v1603_v42, %s1770_s11 }
 0x1e6   :  { %v1605_v43 = vpop.eup %1604 }
 0x1e7   :  { %167 = vrot.lane.b32.xlu1 %v1605_v43, %s1770_s11 }
 0x1eb   :  { %189 = vrot.lane.b32.xlu1 %v188_v45, %s1771_s12 }
 0x255   :  { %v170_v46 = vpop.permute.xlu0 %169 }
 0x256   :  { %v1870_v47 = vmul.f32 %v1599_v28, %v170_v46 }
 0x258   :  { %v177_v49 = vrot.slane %v1870_v47, 7 }
 0x259   :  { %v168_v48 = vpop.permute.xlu1 %167 }
 0x25a   :  { %v1873_v50 = vmul.f32 %v1601_v31, %v168_v48 }
 0x25c   :  { %v179_v51 = vsel %vm178_vm3, %v177_v49, %v1873_v50 }
 0x25d   :  { %v190_v52 = vpop.permute.xlu1 %189  ;;  %180 = vrot.lane.b32.xlu0 %v179_v51, %s1769_s1 }
 0x25e   :  { %192 = vst.msk [vmem:[#allocation3] sm:$0x3] %vm27_vm1, %v190_v52 }
 0x265   :  { %v203_v0 = vld [vmem:[#allocation3] sm:$0x3] }
 0x266   :  { %v300_v1 = vrot.slane %v203_v0, 1 }
 0x2cf   :  { %v181_v53 = vpop.permute.xlu0 %180 }
 0x2d0   :  { %184 = vst.msk [vmem:[#allocation2] sm:$0x3] %vm27_vm1, %v181_v53 }
 0x2d7   :  { %v202_v54 = vld [vmem:[#allocation2] sm:$0x3] }
 0x2d8   :  { %1466 = vmatmul.mubr.msk.f32.vlgmr.msra.gmra.mrb[0].mxu1 %vm39_vm2, %v202_v54 }
 0x2d9   :  { %1554 = vmatpush3.bf16.msra.mxu1 %v1819_v4  ;;  %1487 = vmatprep.mubr.msk.f32.mxu1 %vm1767_vm0, %v1768_v6 }
 0x2da   :  { %1555 = vmatprep.subr.bf16.mxu1 %v1766_v3 }
 0x2dd   :  { %1557 = vmatpush3.bf16.msra.mxu1 %v1837_v9 }
 0x2de   :  { %1564 = vmatprep.subr.bf16.mxu1 %v1766_v3 }
 0x3ab   :  { %v275_v57 = vpop.f32.mrb[0].mxu1 }
 0x3ac   :  { %v280_v58 = vrot.slane %v275_v57, 1  ;;  %v283_v59 = vadd.f32 %v275_v57, %v204_v55  ;;  %v1467_v60 = vpop.f32.mrb[1].mxu1 }
 0x3ae   :  { %v284_v61 = vadd.f32 %v280_v58, %v205_v56  ;;  %1606 = vtanh.f32 %v283_v59  ;;  %v1386_v2 = vmul.f32 -1.442695, %v283_v59 }
 0x3b0   :  { %1608 = vtanh.f32 %v284_v61  ;;  %v1387_v5 = vmul.f32 -1.442695, %v284_v61 }
 0x3b1   :  { %1610 = vpow2.f32 %v1386_v2 }
 0x3b2   :  { %1612 = vpow2.f32 %v1387_v5 }
 0x3b8   :  { %v1607_v62 = vpop.eup %1606 }
 0x3b9   :  { %311 = vrot.lane.b32.xlu1 %v1607_v62, %s1770_s11 }
 0x3ba   :  { %v1609_v63 = vpop.eup %1608 }
 0x3bb   :  { %313 = vrot.lane.b32.xlu0 %v1609_v63, %s1770_s11  ;;  %v1611_v7 = vpop.eup %1610 }
 0x3bc   :  { %v1613_v8 = vpop.eup %1612  ;;  %v291_v10 = vadd.f32 1.0, %v1611_v7 }
 0x3bd   :  { %301 = vrot.lane.b32.xlu1 %v203_v0, %s1769_s1  ;;  %v292_v11 = vadd.f32 1.0, %v1613_v8 }
 0x3be   :  { %1614 = vrcp.f32 %v291_v10 }
 0x3bf   :  { %303 = vrot.lane.b32.xlu0 %v300_v1, %s1769_s1  ;;  %1616 = vrcp.f32 %v292_v11 }
 0x3c8   :  { %v1615_v12 = vpop.eup %1614 }
 0x3c9   :  { %v1617_v15 = vpop.eup %1616 }
 0x42b   :  { %v312_v13 = vpop.permute.xlu1 %311 }
 0x42c   :  { %v317_v14 = vmul.f32 %v1615_v12, %v312_v13 }
 0x42d   :  { %v314_v16 = vpop.permute.xlu0 %313 }
 0x42e   :  { %321 = vrot.lane.b32.xlu1 %v317_v14, %s1769_s1  ;;  %v318_v17 = vmul.f32 %v1617_v15, %v314_v16 }
 0x42f   :  { %v302_v18 = vpop.permute.xlu1 %301 }
 0x430   :  { %323 = vrot.lane.b32.xlu0 %v318_v17, %s1769_s1  ;;  %v307_v19 = vmul.f32 %v1615_v12, %v302_v18 }
 0x431   :  { %v304_v20 = vpop.permute.xlu0 %303 }
 0x432   :  { %v308_v23 = vmul.f32 %v1617_v15, %v304_v20 }
 0x4a0   :  { %v322_v21 = vpop.permute.xlu1 %321 }
 0x4a1   :  { %v327_v22 = vadd.f32 %v322_v21, %v307_v19 }
 0x4a2   :  { %v324_v24 = vpop.permute.xlu0 %323 }
 0x4a3   :  { %1618 = vtanh.f32 %v327_v22  ;;  %v328_v25 = vadd.f32 %v324_v24, %v308_v23 }
 0x4a5   :  { %1620 = vtanh.f32 %v328_v25  ;;  %v351_v27 = vrot.slane %v328_v25, 7  ;;  %v530_v25 = vld [vmem:[%s2211_s0 + $0x3] sm:$0x1] }
 0x4a7   :  { %v352_v29 = vsel %vm178_vm3, %v351_v27, %v327_v22 }
 0x4ad   :  { %v1619_v26 = vpop.eup %1618 }
 0x4ae   :  { %333 = vrot.lane.b32.xlu1 %v1619_v26, %s1770_s11  ;;  %v531_v26 = vld [vmem:[%s2211_s0 + $0xb] sm:$0x1] }
 0x4af   :  { %v1621_v28 = vpop.eup %1620 }
 0x4b0   :  { %335 = vrot.lane.b32.xlu0 %v1621_v28, %s1770_s11 }
 0x4b2   :  { %353 = vrot.lane.b32.xlu1 %v352_v29, %s1771_s12 }
 0x520   :  { %v334_v30 = vpop.permute.xlu1 %333 }
 0x521   :  { %v1906_v34 = vmul.f32 %v1615_v12, %v334_v30 }
 0x522   :  { %v336_v31 = vpop.permute.xlu0 %335 }
 0x523   :  { %v1903_v32 = vmul.f32 %v1617_v15, %v336_v31 }
 0x524   :  { %v354_v33 = vpop.permute.xlu1 %353 }
 0x525   :  { %356 = vst.msk [vmem:[#allocation3] sm:$0x3] %vm27_vm1, %v354_v33  ;;  %v343_v35 = vrot.slane %v1903_v32, 7 }
 0x527   :  { %v344_v36 = vsel %vm178_vm3, %v343_v35, %v1906_v34 }
 0x528   :  { %345 = vrot.lane.b32.xlu0 %v344_v36, %s1769_s1 }
 0x52c   :  { %v366_v49 = vld [vmem:[#allocation3] sm:$0x3] }
 0x52d   :  { %v463_v51 = vrot.slane %v366_v49, 1 }
 0x59a   :  { %v346_v37 = vpop.permute.xlu0 %345 }
 0x59b   :  { %348 = vst.msk [vmem:[#allocation2] sm:$0x3] %vm27_vm1, %v346_v37 }
 0x5a2   :  { %v365_v38 = vld [vmem:[#allocation2] sm:$0x3] }
 0x5a3   :  { %1477 = vmatmul.mubr.msk.f32.vlgmr.msra.gmra.mrb[2].mxu0 %vm39_vm2, %v365_v38 }
 0x5a4   :  { %1560 = vmatpush3.bf16.msra.mxu0 %v1819_v4  ;;  %1498 = vmatprep.mubr.msk.f32.mxu0 %vm1767_vm0, %v1768_v6 }
 0x5a5   :  { %1561 = vmatprep.subr.bf16.mxu0 %v1766_v3 }
 0x5a8   :  { %1563 = vmatpush3.bf16.msra.mxu0 %v1837_v9 }
 0x5a9   :  { %1570 = vmatprep.subr.bf16.mxu0 %v1766_v3 }
 0x676   :  { %v438_v41 = vpop.f32.mrb[2].mxu0 }
 0x677   :  { %v443_v42 = vrot.slane %v438_v41, 1  ;;  %v446_v43 = vadd.f32 %v438_v41, %v367_v39  ;;  %v1478_v44 = vpop.f32.mrb[3].mxu0 }
 0x679   :  { %v447_v45 = vadd.f32 %v443_v42, %v368_v40  ;;  %1622 = vtanh.f32 %v446_v43  ;;  %v1389_v52 = vmul.f32 -1.442695, %v446_v43 }
 0x67b   :  { %1624 = vtanh.f32 %v447_v45  ;;  %v1390_v53 = vmul.f32 -1.442695, %v447_v45 }
 0x67c   :  { %1626 = vpow2.f32 %v1389_v52 }
 0x67d   :  { %1628 = vpow2.f32 %v1390_v53 }
 0x683   :  { %v1623_v46 = vpop.eup %1622 }
 0x684   :  { %474 = vrot.lane.b32.xlu1 %v1623_v46, %s1770_s11 }
 0x685   :  { %v1625_v48 = vpop.eup %1624 }
 0x686   :  { %476 = vrot.lane.b32.xlu0 %v1625_v48, %s1770_s11  ;;  %v1627_v54 = vpop.eup %1626 }
 0x687   :  { %v1629_v55 = vpop.eup %1628  ;;  %v454_v56 = vadd.f32 1.0, %v1627_v54 }
 0x688   :  { %464 = vrot.lane.b32.xlu1 %v366_v49, %s1769_s1  ;;  %v455_v57 = vadd.f32 1.0, %v1629_v55 }
 0x689   :  { %1630 = vrcp.f32 %v454_v56 }
 0x68a   :  { %466 = vrot.lane.b32.xlu0 %v463_v51, %s1769_s1  ;;  %1632 = vrcp.f32 %v455_v57 }
 0x693   :  { %v1631_v58 = vpop.eup %1630 }
 0x694   :  { %v1633_v61 = vpop.eup %1632 }
 0x6f6   :  { %v475_v59 = vpop.permute.xlu1 %474 }
 0x6f7   :  { %v480_v60 = vmul.f32 %v1631_v58, %v475_v59 }
 0x6f8   :  { %v477_v62 = vpop.permute.xlu0 %476 }
 0x6f9   :  { %484 = vrot.lane.b32.xlu1 %v480_v60, %s1769_s1  ;;  %v481_v63 = vmul.f32 %v1633_v61, %v477_v62 }
 0x6fa   :  { %v465_v0 = vpop.permute.xlu1 %464 }
 0x6fb   :  { %486 = vrot.lane.b32.xlu0 %v481_v63, %s1769_s1  ;;  %v470_v1 = vmul.f32 %v1631_v58, %v465_v0 }
 0x6fc   :  { %v467_v2 = vpop.permute.xlu0 %466 }
 0x6fd   :  { %v471_v8 = vmul.f32 %v1633_v61, %v467_v2 }
 0x76b   :  { %v485_v5 = vpop.permute.xlu1 %484 }
 0x76c   :  { %v490_v7 = vadd.f32 %v485_v5, %v470_v1 }
 0x76d   :  { %v487_v10 = vpop.permute.xlu0 %486 }
 0x76e   :  { %1634 = vtanh.f32 %v490_v7  ;;  %v491_v11 = vadd.f32 %v487_v10, %v471_v8 }
 0x770   :  { %1636 = vtanh.f32 %v491_v11  ;;  %v514_v13 = vrot.slane %v491_v11, 7 }
 0x772   :  { %v515_v15 = vsel %vm178_vm3, %v514_v13, %v490_v7  ;;  %v693_v13 = vld [vmem:[%s2211_s0 + $0x4] sm:$0x1] }
 0x778   :  { %v1635_v12 = vpop.eup %1634 }
 0x779   :  { %496 = vrot.lane.b32.xlu1 %v1635_v12, %s1770_s11 }
 0x77a   :  { %v1637_v14 = vpop.eup %1636 }
 0x77b   :  { %498 = vrot.lane.b32.xlu0 %v1637_v14, %s1770_s11  ;;  %v694_v14 = vld [vmem:[%s2211_s0 + $0xc] sm:$0x1] }
 0x77d   :  { %516 = vrot.lane.b32.xlu1 %v515_v15, %s1771_s12 }
 0x7eb   :  { %v497_v16 = vpop.permute.xlu1 %496 }
 0x7ec   :  { %v1939_v20 = vmul.f32 %v1631_v58, %v497_v16 }
 0x7ed   :  { %v499_v17 = vpop.permute.xlu0 %498 }
 0x7ee   :  { %v1936_v18 = vmul.f32 %v1633_v61, %v499_v17 }
 0x7ef   :  { %v517_v19 = vpop.permute.xlu1 %516 }
 0x7f0   :  { %519 = vst.msk [vmem:[#allocation3] sm:$0x3] %vm27_vm1, %v517_v19  ;;  %v506_v21 = vrot.slane %v1936_v18, 7 }
 0x7f2   :  { %v507_v22 = vsel %vm178_vm3, %v506_v21, %v1939_v20 }
 0x7f3   :  { %508 = vrot.lane.b32.xlu0 %v507_v22, %s1769_s1 }
 0x7f7   :  { %v529_v36 = vld [vmem:[#allocation3] sm:$0x3] }
 0x7f8   :  { %v626_v37 = vrot.slane %v529_v36, 1 }
 0x865   :  { %v509_v23 = vpop.permute.xlu0 %508 }
 0x866   :  { %511 = vst.msk [vmem:[#allocation2] sm:$0x3] %vm27_vm1, %v509_v23 }
 0x86d   :  { %v528_v24 = vld [vmem:[#allocation2] sm:$0x3] }
 0x86e   :  { %1488 = vmatmul.mubr.msk.f32.vlgmr.msra.gmra.mrb[2].mxu1 %vm39_vm2, %v528_v24 }
 0x86f   :  { %1566 = vmatpush3.bf16.msra.mxu1 %v1819_v4  ;;  %1509 = vmatprep.mubr.msk.f32.mxu1 %vm1767_vm0, %v1768_v6 }
 0x870   :  { %1567 = vmatprep.subr.bf16.mxu1 %v1766_v3 }
 0x873   :  { %1569 = vmatpush3.bf16.msra.mxu1 %v1837_v9 }
 0x874   :  { %1576 = vmatprep.subr.bf16.mxu1 %v1766_v3 }
 0x941   :  { %v601_v27 = vpop.f32.mrb[2].mxu1 }
 0x942   :  { %v606_v28 = vrot.slane %v601_v27, 1  ;;  %v609_v29 = vadd.f32 %v601_v27, %v530_v25  ;;  %v1489_v30 = vpop.f32.mrb[3].mxu1 }
 0x944   :  { %v610_v31 = vadd.f32 %v606_v28, %v531_v26  ;;  %1638 = vtanh.f32 %v609_v29  ;;  %v1392_v38 = vmul.f32 -1.442695, %v609_v29 }
 0x946   :  { %1640 = vtanh.f32 %v610_v31  ;;  %v1393_v39 = vmul.f32 -1.442695, %v610_v31 }
 0x947   :  { %1642 = vpow2.f32 %v1392_v38 }
 0x948   :  { %1644 = vpow2.f32 %v1393_v39 }
 0x94e   :  { %v1639_v33 = vpop.eup %1638 }
 0x94f   :  { %637 = vrot.lane.b32.xlu1 %v1639_v33, %s1770_s11 }
 0x950   :  { %v1641_v35 = vpop.eup %1640 }
 0x951   :  { %639 = vrot.lane.b32.xlu0 %v1641_v35, %s1770_s11  ;;  %v1643_v40 = vpop.eup %1642 }
 0x952   :  { %v1645_v41 = vpop.eup %1644  ;;  %v617_v42 = vadd.f32 1.0, %v1643_v40 }
 0x953   :  { %627 = vrot.lane.b32.xlu1 %v529_v36, %s1769_s1  ;;  %v618_v43 = vadd.f32 1.0, %v1645_v41 }
 0x954   :  { %1646 = vrcp.f32 %v617_v42 }
 0x955   :  { %629 = vrot.lane.b32.xlu0 %v626_v37, %s1769_s1  ;;  %1648 = vrcp.f32 %v618_v43 }
 0x95e   :  { %v1647_v44 = vpop.eup %1646 }
 0x95f   :  { %v1649_v48 = vpop.eup %1648 }
 0x9c1   :  { %v638_v45 = vpop.permute.xlu1 %637 }
 0x9c2   :  { %v643_v46 = vmul.f32 %v1647_v44, %v638_v45 }
 0x9c3   :  { %v640_v49 = vpop.permute.xlu0 %639 }
 0x9c4   :  { %647 = vrot.lane.b32.xlu1 %v643_v46, %s1769_s1  ;;  %v644_v51 = vmul.f32 %v1649_v48, %v640_v49 }
 0x9c5   :  { %v628_v52 = vpop.permute.xlu1 %627 }
 0x9c6   :  { %649 = vrot.lane.b32.xlu0 %v644_v51, %s1769_s1  ;;  %v633_v53 = vmul.f32 %v1647_v44, %v628_v52 }
 0x9c7   :  { %v630_v54 = vpop.permute.xlu0 %629 }
 0x9c8   :  { %v634_v57 = vmul.f32 %v1649_v48, %v630_v54 }
 0xa36   :  { %v648_v55 = vpop.permute.xlu1 %647 }
 0xa37   :  { %v653_v56 = vadd.f32 %v648_v55, %v633_v53 }
 0xa38   :  { %v650_v58 = vpop.permute.xlu0 %649 }
 0xa39   :  { %1650 = vtanh.f32 %v653_v56  ;;  %v654_v59 = vadd.f32 %v650_v58, %v634_v57 }
 0xa3b   :  { %1652 = vtanh.f32 %v654_v59  ;;  %v677_v61 = vrot.slane %v654_v59, 7 }
 0xa3d   :  { %v678_v63 = vsel %vm178_vm3, %v677_v61, %v653_v56 }
 0xa43   :  { %v1651_v60 = vpop.eup %1650 }
 0xa44   :  { %659 = vrot.lane.b32.xlu1 %v1651_v60, %s1770_s11 }
 0xa45   :  { %v1653_v62 = vpop.eup %1652 }
 0xa46   :  { %661 = vrot.lane.b32.xlu0 %v1653_v62, %s1770_s11 }
 0xa48   :  { %679 = vrot.lane.b32.xlu1 %v678_v63, %s1771_s12  ;;  %v856_v63 = vld [vmem:[%s2211_s0 + $0x5] sm:$0x1] }
 0xab6   :  { %v660_v0 = vpop.permute.xlu1 %659 }
 0xab7   :  { %v1972_v7 = vmul.f32 %v1647_v44, %v660_v0  ;;  %v857_v0 = vld [vmem:[%s2211_s0 + $0xd] sm:$0x1] }
 0xab8   :  { %v662_v1 = vpop.permute.xlu0 %661 }
 0xab9   :  { %v1969_v2 = vmul.f32 %v1649_v48, %v662_v1 }
 0xaba   :  { %v680_v5 = vpop.permute.xlu1 %679 }
 0xabb   :  { %682 = vst.msk [vmem:[#allocation3] sm:$0x3] %vm27_vm1, %v680_v5  ;;  %v669_v8 = vrot.slane %v1969_v2, 7 }
 0xabd   :  { %v670_v10 = vsel %vm178_vm3, %v669_v8, %v1972_v7 }
 0xabe   :  { %671 = vrot.lane.b32.xlu0 %v670_v10, %s1769_s1 }
 0xac2   :  { %v692_v24 = vld [vmem:[#allocation3] sm:$0x3] }
 0xac3   :  { %v789_v25 = vrot.slane %v692_v24, 1 }
 0xb30   :  { %v672_v11 = vpop.permute.xlu0 %671 }
 0xb31   :  { %674 = vst.msk [vmem:[#allocation2] sm:$0x3] %vm27_vm1, %v672_v11 }
 0xb38   :  { %v691_v12 = vld [vmem:[#allocation2] sm:$0x3] }
 0xb39   :  { %1499 = vmatmul.mubr.msk.f32.vlgmr.msra.gmra.mrb[4].mxu0 %vm39_vm2, %v691_v12 }
 0xb3a   :  { %1572 = vmatpush3.bf16.msra.mxu0 %v1819_v4  ;;  %1520 = vmatprep.mubr.msk.f32.mxu0 %vm1767_vm0, %v1768_v6 }
 0xb3b   :  { %1573 = vmatprep.subr.bf16.mxu0 %v1766_v3 }
 0xb3e   :  { %1575 = vmatpush3.bf16.msra.mxu0 %v1837_v9 }
 0xc0c   :  { %v764_v15 = vpop.f32.mrb[4].mxu0 }
 0xc0d   :  { %v769_v16 = vrot.slane %v764_v15, 1  ;;  %v772_v17 = vadd.f32 %v764_v15, %v693_v13  ;;  %v1500_v19 = vpop.f32.mrb[5].mxu0 }
 0xc0f   :  { %v773_v21 = vadd.f32 %v769_v16, %v694_v14  ;;  %1654 = vtanh.f32 %v772_v17  ;;  %v1395_v26 = vmul.f32 -1.442695, %v772_v17 }
 0xc11   :  { %1656 = vtanh.f32 %v773_v21  ;;  %v1396_v27 = vmul.f32 -1.442695, %v773_v21 }
 0xc12   :  { %1658 = vpow2.f32 %v1395_v26 }
 0xc13   :  { %1660 = vpow2.f32 %v1396_v27 }
 0xc19   :  { %v1655_v22 = vpop.eup %1654 }
 0xc1a   :  { %800 = vrot.lane.b32.xlu1 %v1655_v22, %s1770_s11 }
 0xc1b   :  { %v1657_v23 = vpop.eup %1656 }
 0xc1c   :  { %802 = vrot.lane.b32.xlu0 %v1657_v23, %s1770_s11  ;;  %v1659_v28 = vpop.eup %1658 }
 0xc1d   :  { %v1661_v29 = vpop.eup %1660  ;;  %v780_v30 = vadd.f32 1.0, %v1659_v28 }
 0xc1e   :  { %790 = vrot.lane.b32.xlu1 %v692_v24, %s1769_s1  ;;  %v781_v31 = vadd.f32 1.0, %v1661_v29 }
 0xc1f   :  { %1662 = vrcp.f32 %v780_v30 }
 0xc20   :  { %792 = vrot.lane.b32.xlu0 %v789_v25, %s1769_s1  ;;  %1664 = vrcp.f32 %v781_v31 }
 0xc29   :  { %v1663_v33 = vpop.eup %1662 }
 0xc2a   :  { %v1665_v37 = vpop.eup %1664 }
 0xc8c   :  { %v801_v35 = vpop.permute.xlu1 %800 }
 0xc8d   :  { %v806_v36 = vmul.f32 %v1663_v33, %v801_v35 }
 0xc8e   :  { %v803_v38 = vpop.permute.xlu0 %802 }
 0xc8f   :  { %810 = vrot.lane.b32.xlu1 %v806_v36, %s1769_s1  ;;  %v807_v39 = vmul.f32 %v1665_v37, %v803_v38 }
 0xc90   :  { %v791_v40 = vpop.permute.xlu1 %790 }
 0xc91   :  { %812 = vrot.lane.b32.xlu0 %v807_v39, %s1769_s1  ;;  %v796_v41 = vmul.f32 %v1663_v33, %v791_v40 }
 0xc92   :  { %v793_v42 = vpop.permute.xlu0 %792 }
 0xc93   :  { %v797_v45 = vmul.f32 %v1665_v37, %v793_v42 }
 0xd01   :  { %v811_v43 = vpop.permute.xlu1 %810 }
 0xd02   :  { %v816_v44 = vadd.f32 %v811_v43, %v796_v41 }
 0xd03   :  { %v813_v46 = vpop.permute.xlu0 %812 }
 0xd04   :  { %1666 = vtanh.f32 %v816_v44  ;;  %v817_v48 = vadd.f32 %v813_v46, %v797_v45 }
 0xd06   :  { %1668 = vtanh.f32 %v817_v48  ;;  %v840_v51 = vrot.slane %v817_v48, 7 }
 0xd08   :  { %v841_v53 = vsel %vm178_vm3, %v840_v51, %v816_v44  ;;  %v1019_v51 = vld [vmem:[%s2211_s0 + $0x6] sm:$0x1] }
 0xd0e   :  { %v1667_v49 = vpop.eup %1666 }
 0xd0f   :  { %822 = vrot.lane.b32.xlu1 %v1667_v49, %s1770_s11 }
 0xd10   :  { %v1669_v52 = vpop.eup %1668 }
 0xd11   :  { %824 = vrot.lane.b32.xlu0 %v1669_v52, %s1770_s11  ;;  %v1020_v52 = vld [vmem:[%s2211_s0 + $0xe] sm:$0x1] }
 0xd13   :  { %842 = vrot.lane.b32.xlu1 %v841_v53, %s1771_s12 }
 0xd81   :  { %v823_v54 = vpop.permute.xlu1 %822 }
 0xd82   :  { %v2004_v58 = vmul.f32 %v1663_v33, %v823_v54 }
 0xd83   :  { %v825_v55 = vpop.permute.xlu0 %824 }
 0xd84   :  { %v2001_v56 = vmul.f32 %v1665_v37, %v825_v55 }
 0xd85   :  { %v843_v57 = vpop.permute.xlu1 %842 }
 0xd86   :  { %845 = vst.msk [vmem:[#allocation3] sm:$0x3] %vm27_vm1, %v843_v57  ;;  %v832_v59 = vrot.slane %v2001_v56, 7 }
 0xd88   :  { %v833_v60 = vsel %vm178_vm3, %v832_v59, %v2004_v58 }
 0xd89   :  { %834 = vrot.lane.b32.xlu0 %v833_v60, %s1769_s1 }
 0xdfb   :  { %v835_v61 = vpop.permute.xlu0 %834 }
 0xdfc   :  { %837 = vst.msk [vmem:[#allocation2] sm:$0x3] %vm27_vm1, %v835_v61 }
 0xe03   :  { %v854_v62 = vld [vmem:[#allocation2] sm:$0x3] }
 0xe04   :  { %1510 = vmatmul.mubr.msk.f32.vlgmr.msra.gmra.mrb[4].mxu1 %vm39_vm2, %v854_v62 }
 0xe05   :  { %1578 = vmatpush3.bf16.msra.mxu1 %v1819_v4  ;;  %1531 = vmatprep.mubr.msk.f32.mxu1 %vm1767_vm0, %v1768_v6 }
 0xe06   :  { %1579 = vmatprep.subr.bf16.mxu1 %v1766_v3 }
 0xe09   :  { %1581 = vmatpush3.bf16.msra.mxu1 %v1837_v9  ;;  %v855_v9 = vld [vmem:[#allocation3] sm:$0x3] }
 0xe0a   :  { %v952_v11 = vrot.slane %v855_v9, 1 }
 0xed7   :  { %v927_v1 = vpop.f32.mrb[4].mxu1 }
 0xed8   :  { %v932_v5 = vrot.slane %v927_v1, 1  ;;  %v935_v8 = vadd.f32 %v927_v1, %v856_v63  ;;  %v1511_v10 = vpop.f32.mrb[5].mxu1 }
 0xeda   :  { %v936_v4 = vadd.f32 %v932_v5, %v857_v0  ;;  %1670 = vtanh.f32 %v935_v8  ;;  %v1398_v12 = vmul.f32 -1.442695, %v935_v8 }
 0xedc   :  { %1672 = vtanh.f32 %v936_v4  ;;  %v1399_v13 = vmul.f32 -1.442695, %v936_v4 }
 0xedd   :  { %1674 = vpow2.f32 %v1398_v12 }
 0xede   :  { %1676 = vpow2.f32 %v1399_v13 }
 0xee4   :  { %v1671_v6 = vpop.eup %1670 }
 0xee5   :  { %963 = vrot.lane.b32.xlu1 %v1671_v6, %s1770_s11 }
 0xee6   :  { %v1673_v3 = vpop.eup %1672 }
 0xee7   :  { %965 = vrot.lane.b32.xlu0 %v1673_v3, %s1770_s11  ;;  %v1675_v14 = vpop.eup %1674 }
 0xee8   :  { %v1677_v15 = vpop.eup %1676  ;;  %v943_v16 = vadd.f32 1.0, %v1675_v14 }
 0xee9   :  { %953 = vrot.lane.b32.xlu1 %v855_v9, %s1769_s1  ;;  %v944_v17 = vadd.f32 1.0, %v1677_v15 }
 0xeea   :  { %1678 = vrcp.f32 %v943_v16 }
 0xeeb   :  { %955 = vrot.lane.b32.xlu0 %v952_v11, %s1769_s1  ;;  %1680 = vrcp.f32 %v944_v17 }
 0xef4   :  { %v1679_v19 = vpop.eup %1678 }
 0xef5   :  { %v1681_v23 = vpop.eup %1680 }
 0xf57   :  { %v964_v21 = vpop.permute.xlu1 %963 }
 0xf58   :  { %v969_v22 = vmul.f32 %v1679_v19, %v964_v21 }
 0xf59   :  { %v966_v24 = vpop.permute.xlu0 %965 }
 0xf5a   :  { %973 = vrot.lane.b32.xlu1 %v969_v22, %s1769_s1  ;;  %v970_v25 = vmul.f32 %v1681_v23, %v966_v24 }
 0xf5b   :  { %v954_v26 = vpop.permute.xlu1 %953 }
 0xf5c   :  { %975 = vrot.lane.b32.xlu0 %v970_v25, %s1769_s1  ;;  %v959_v27 = vmul.f32 %v1679_v19, %v954_v26 }
 0xf5d   :  { %v956_v28 = vpop.permute.xlu0 %955 }
 0xf5e   :  { %v960_v31 = vmul.f32 %v1681_v23, %v956_v28 }
 0xfcc   :  { %v974_v29 = vpop.permute.xlu1 %973 }
 0xfcd   :  { %v979_v30 = vadd.f32 %v974_v29, %v959_v27 }
 0xfce   :  { %v976_v33 = vpop.permute.xlu0 %975 }
 0xfcf   :  { %1682 = vtanh.f32 %v979_v30  ;;  %v980_v35 = vadd.f32 %v976_v33, %v960_v31 }
 0xfd1   :  { %1684 = vtanh.f32 %v980_v35  ;;  %v1003_v37 = vrot.slane %v980_v35, 7 }
 0xfd3   :  { %v1004_v39 = vsel %vm178_vm3, %v1003_v37, %v979_v30 }
 0xfd9   :  { %v1683_v36 = vpop.eup %1682 }
 0xfda   :  { %985 = vrot.lane.b32.xlu1 %v1683_v36, %s1770_s11 }
 0xfdb   :  { %v1685_v38 = vpop.eup %1684 }
 0xfdc   :  { %987 = vrot.lane.b32.xlu0 %v1685_v38, %s1770_s11 }
 0xfde   :  { %1005 = vrot.lane.b32.xlu1 %v1004_v39, %s1771_s12  ;;  %v1182_v39 = vld [vmem:[%s2211_s0 + $0x7] sm:$0x1] }
0x104c   :  { %v986_v40 = vpop.permute.xlu1 %985 }
0x104d   :  { %v2036_v44 = vmul.f32 %v1679_v19, %v986_v40  ;;  %v1183_v40 = vld [vmem:[%s2211_s0 + $0xf] sm:$0x1] }
0x104e   :  { %v988_v41 = vpop.permute.xlu0 %987 }
0x104f   :  { %v2033_v42 = vmul.f32 %v1681_v23, %v988_v41 }
0x1050   :  { %v1006_v43 = vpop.permute.xlu1 %1005 }
0x1051   :  { %1008 = vst.msk [vmem:[#allocation3] sm:$0x3] %vm27_vm1, %v1006_v43  ;;  %v995_v45 = vrot.slane %v2033_v42, 7 }
0x1053   :  { %v996_v46 = vsel %vm178_vm3, %v995_v45, %v2036_v44 }
0x1054   :  { %997 = vrot.lane.b32.xlu0 %v996_v46, %s1769_s1 }
0x1058   :  { %v1018_v62 = vld [vmem:[#allocation3] sm:$0x3] }
0x1059   :  { %v1115_v63 = vrot.slane %v1018_v62, 1 }
0x10c6   :  { %v998_v48 = vpop.permute.xlu0 %997 }
0x10c7   :  { %1000 = vst.msk [vmem:[#allocation2] sm:$0x3] %vm27_vm1, %v998_v48 }
0x10ce   :  { %v1017_v49 = vld [vmem:[#allocation2] sm:$0x3] }
0x10cf   :  { %1521 = vmatmul.mubr.msk.f32.vlgmr.msra.gmra.mrb[6].mxu0 %vm39_vm2, %v1017_v49 }
0x11a2   :  { %v1090_v53 = vpop.f32.mrb[6].mxu0 }
0x11a3   :  { %v1095_v54 = vrot.slane %v1090_v53, 1  ;;  %v1098_v55 = vadd.f32 %v1090_v53, %v1019_v51  ;;  %v1522_v57 = vpop.f32.mrb[7].mxu0 }
0x11a5   :  { %v1099_v59 = vadd.f32 %v1095_v54, %v1020_v52  ;;  %1686 = vtanh.f32 %v1098_v55  ;;  %v1401_v0 = vmul.f32 -1.442695, %v1098_v55 }
0x11a7   :  { %1688 = vtanh.f32 %v1099_v59  ;;  %v1402_v1 = vmul.f32 -1.442695, %v1099_v59 }
0x11a8   :  { %1690 = vpow2.f32 %v1401_v0 }
0x11a9   :  { %1692 = vpow2.f32 %v1402_v1 }
0x11af   :  { %v1687_v60 = vpop.eup %1686 }
0x11b0   :  { %1126 = vrot.lane.b32.xlu1 %v1687_v60, %s1770_s11 }
0x11b1   :  { %v1689_v61 = vpop.eup %1688 }
0x11b2   :  { %1128 = vrot.lane.b32.xlu0 %v1689_v61, %s1770_s11  ;;  %v1691_v5 = vpop.eup %1690 }
0x11b3   :  { %v1693_v8 = vpop.eup %1692  ;;  %v1106_v10 = vadd.f32 1.0, %v1691_v5 }
0x11b4   :  { %1116 = vrot.lane.b32.xlu1 %v1018_v62, %s1769_s1  ;;  %v1107_v4 = vadd.f32 1.0, %v1693_v8 }
0x11b5   :  { %1694 = vrcp.f32 %v1106_v10 }
0x11b6   :  { %1118 = vrot.lane.b32.xlu0 %v1115_v63, %s1769_s1  ;;  %1696 = vrcp.f32 %v1107_v4 }
0x11bf   :  { %v1695_v6 = vpop.eup %1694 }
0x11c0   :  { %v1697_v11 = vpop.eup %1696 }
0x1222   :  { %v1127_v3 = vpop.permute.xlu1 %1126 }
0x1223   :  { %v1132_v9 = vmul.f32 %v1695_v6, %v1127_v3 }
0x1224   :  { %v1129_v12 = vpop.permute.xlu0 %1128 }
0x1225   :  { %1136 = vrot.lane.b32.xlu1 %v1132_v9, %s1769_s1  ;;  %v1133_v13 = vmul.f32 %v1697_v11, %v1129_v12 }
0x1226   :  { %v1117_v14 = vpop.permute.xlu1 %1116 }
0x1227   :  { %1138 = vrot.lane.b32.xlu0 %v1133_v13, %s1769_s1  ;;  %v1122_v15 = vmul.f32 %v1695_v6, %v1117_v14 }
0x1228   :  { %v1119_v16 = vpop.permute.xlu0 %1118 }
0x1229   :  { %v1123_v21 = vmul.f32 %v1697_v11, %v1119_v16 }
0x1297   :  { %v1137_v17 = vpop.permute.xlu1 %1136 }
0x1298   :  { %v1142_v19 = vadd.f32 %v1137_v17, %v1122_v15 }
0x1299   :  { %v1139_v22 = vpop.permute.xlu0 %1138 }
0x129a   :  { %1698 = vtanh.f32 %v1142_v19  ;;  %v1143_v23 = vadd.f32 %v1139_v22, %v1123_v21 }
0x129c   :  { %1700 = vtanh.f32 %v1143_v23  ;;  %v1166_v25 = vrot.slane %v1143_v23, 7 }
0x129e   :  { %v1167_v27 = vsel %vm178_vm3, %v1166_v25, %v1142_v19 }
0x12a4   :  { %v1699_v24 = vpop.eup %1698 }
0x12a5   :  { %1148 = vrot.lane.b32.xlu1 %v1699_v24, %s1770_s11 }
0x12a6   :  { %v1701_v26 = vpop.eup %1700 }
0x12a7   :  { %1150 = vrot.lane.b32.xlu0 %v1701_v26, %s1770_s11 }
0x12a9   :  { %1168 = vrot.lane.b32.xlu1 %v1167_v27, %s1771_s12 }
0x1317   :  { %v1149_v28 = vpop.permute.xlu1 %1148 }
0x1318   :  { %v2063_v33 = vmul.f32 %v1695_v6, %v1149_v28 }
0x1319   :  { %v1151_v29 = vpop.permute.xlu0 %1150 }
0x131a   :  { %v2060_v30 = vmul.f32 %v1697_v11, %v1151_v29 }
0x131b   :  { %v1169_v31 = vpop.permute.xlu1 %1168 }
0x131c   :  { %1171 = vst.msk [vmem:[#allocation3] sm:$0x3] %vm27_vm1, %v1169_v31  ;;  %v1158_v35 = vrot.slane %v2060_v30, 7 }
0x131e   :  { %v1159_v36 = vsel %vm178_vm3, %v1158_v35, %v2063_v33 }
0x131f   :  { %1160 = vrot.lane.b32.xlu0 %v1159_v36, %s1769_s1 }
0x1323   :  { %v1181_v52 = vld [vmem:[#allocation3] sm:$0x3] }
0x1324   :  { %v1278_v53 = vrot.slane %v1181_v52, 1 }
0x1391   :  { %v1161_v37 = vpop.permute.xlu0 %1160 }
0x1392   :  { %1163 = vst.msk [vmem:[#allocation2] sm:$0x3] %vm27_vm1, %v1161_v37 }
0x1399   :  { %v1180_v38 = vld [vmem:[#allocation2] sm:$0x3] }
0x139a   :  { %1532 = vmatmul.mubr.msk.f32.vlgmr.msra.gmra.mrb[6].mxu1 %vm39_vm2, %v1180_v38 }
0x146d   :  { %v1253_v41 = vpop.f32.mrb[6].mxu1 }
0x146e   :  { %v1258_v43 = vrot.slane %v1253_v41, 1  ;;  %v1261_v45 = vadd.f32 %v1253_v41, %v1182_v39  ;;  %v1533_v46 = vpop.f32.mrb[7].mxu1 }
0x1470   :  { %v1262_v48 = vadd.f32 %v1258_v43, %v1183_v40  ;;  %1702 = vtanh.f32 %v1261_v45  ;;  %v1404_v54 = vmul.f32 -1.442695, %v1261_v45 }
0x1472   :  { %1704 = vtanh.f32 %v1262_v48  ;;  %v1405_v55 = vmul.f32 -1.442695, %v1262_v48 }
0x1473   :  { %1706 = vpow2.f32 %v1404_v54 }
0x1474   :  { %1708 = vpow2.f32 %v1405_v55 }
0x147a   :  { %v1703_v49 = vpop.eup %1702 }
0x147b   :  { %1289 = vrot.lane.b32.xlu1 %v1703_v49, %s1770_s11 }
0x147c   :  { %v1705_v51 = vpop.eup %1704 }
0x147d   :  { %1291 = vrot.lane.b32.xlu0 %v1705_v51, %s1770_s11  ;;  %v1707_v57 = vpop.eup %1706 }
0x147e   :  { %v1709_v59 = vpop.eup %1708  ;;  %v1269_v60 = vadd.f32 1.0, %v1707_v57 }
0x147f   :  { %1279 = vrot.lane.b32.xlu1 %v1181_v52, %s1769_s1  ;;  %v1270_v61 = vadd.f32 1.0, %v1709_v59 }
0x1480   :  { %1710 = vrcp.f32 %v1269_v60 }
0x1481   :  { %1281 = vrot.lane.b32.xlu0 %v1278_v53, %s1769_s1  ;;  %1712 = vrcp.f32 %v1270_v61 }
0x148a   :  { %v1711_v62 = vpop.eup %1710 }
0x148b   :  { %v1713_v1 = vpop.eup %1712 }
0x14ed   :  { %v1290_v63 = vpop.permute.xlu1 %1289 }
0x14ee   :  { %v1295_v0 = vmul.f32 %v1711_v62, %v1290_v63 }
0x14ef   :  { %v1292_v5 = vpop.permute.xlu0 %1291 }
0x14f0   :  { %1299 = vrot.lane.b32.xlu1 %v1295_v0, %s1769_s1  ;;  %v1296_v8 = vmul.f32 %v1713_v1, %v1292_v5 }
0x14f1   :  { %v1280_v10 = vpop.permute.xlu1 %1279 }
0x14f2   :  { %1301 = vrot.lane.b32.xlu0 %v1296_v8, %s1769_s1  ;;  %v1285_v4 = vmul.f32 %v1711_v62, %v1280_v10 }
0x14f3   :  { %v1282_v6 = vpop.permute.xlu0 %1281 }
0x14f4   :  { %v1286_v11 = vmul.f32 %v1713_v1, %v1282_v6 }
0x1562   :  { %v1300_v3 = vpop.permute.xlu1 %1299 }
0x1563   :  { %v1305_v9 = vadd.f32 %v1300_v3, %v1285_v4 }
0x1564   :  { %v1302_v12 = vpop.permute.xlu0 %1301 }
0x1565   :  { %1714 = vtanh.f32 %v1305_v9  ;;  %v1306_v13 = vadd.f32 %v1302_v12, %v1286_v11 }
0x1567   :  { %1716 = vtanh.f32 %v1306_v13  ;;  %v1329_v15 = vrot.slane %v1306_v13, 7 }
0x1569   :  { %v1330_v17 = vsel %vm178_vm3, %v1329_v15, %v1305_v9 }
0x156f   :  { %v1715_v14 = vpop.eup %1714 }
0x1570   :  { %1311 = vrot.lane.b32.xlu1 %v1715_v14, %s1770_s11 }
0x1571   :  { %v1717_v16 = vpop.eup %1716 }
0x1572   :  { %1313 = vrot.lane.b32.xlu0 %v1717_v16, %s1770_s11 }
0x1574   :  { %1331 = vrot.lane.b32.xlu1 %v1330_v17, %s1771_s12  ;;  %s1772_s12 = smov [#allocation6]  }
0x1575   :  { %s1368_s17 = sshll.u32 %s1772_s12, 4  ;;  %s1369_s17 = int_to_ptr.vmem [resolvable:$true] %s1368_s17 }
0x1576   :  { %193 = vrot.lane.b32.xlu0 %v1873_v50, %s1769_s1  ;;  %s1718_s24 = scalar_lea.vmem %s1369_s17, 32  ;;  %p1723_p1 = scmp.lt.s32.totalorder %s1369_s17, %s1369_s17 }
0x1577   :  { %p1719_p0 = scmp.ne.s32.totalorder %s1369_s17, %s1718_s24  ;;  %p1724_p2 = scmp.lt.s32.totalorder %s1718_s24, %s1718_s24 }
0x1578   :  { %195 = vrot.lane.b32.xlu1 %v1870_v47, %s1769_s1 }
0x1579   :  { %p1725_p3 = por %p1724_p2, %p1723_p1 }
0x157a   :  { %357 = vrot.lane.b32.xlu0 %v1906_v34, %s1769_s1 }
0x157b   :  { %p1726_p4 = pnand %p1725_p3, %p1719_p0 }
0x157c   :  { %359 = vrot.lane.b32.xlu1 %v1903_v32, %s1769_s1 }
0x157e   :  { %520 = vrot.lane.b32.xlu0 %v1939_v20, %s1769_s1 }
0x1580   :  { %522 = vrot.lane.b32.xlu1 %v1936_v18, %s1769_s1 }
0x1582   :  { %683 = vrot.lane.b32.xlu0 %v1972_v7, %s1769_s1 }
0x1584   :  { %685 = vrot.lane.b32.xlu1 %v1969_v2, %s1769_s1 }
0x1586   :  { %846 = vrot.lane.b32.xlu0 %v2004_v58, %s1769_s1 }
0x1588   :  { %848 = vrot.lane.b32.xlu1 %v2001_v56, %s1769_s1 }
0x158c   :  { %1011 = vrot.lane.b32.xlu1 %v2033_v42, %s1769_s1 }
0x1590   :  { %1174 = vrot.lane.b32.xlu1 %v2060_v30, %s1769_s1 }
0x15e2   :  { %v1312_v47 = vpop.permute.xlu1 %1311 }
0x15e3   :  { %v1317_v18 = vmul.f32 %v1711_v62, %v1312_v47 }
0x15e4   :  { %v1314_v50 = vpop.permute.xlu0 %1313 }
0x15e5   :  { %v1318_v32 = vmul.f32 %v1713_v1, %v1314_v50 }
0x15e6   :  { %v1332_v34 = vpop.permute.xlu1 %1331 }
0x15e7   :  { %1334 = vst.msk [vmem:[#allocation3] sm:$0x3] %vm27_vm1, %v1332_v34  ;;  %v1321_v20 = vrot.slane %v1318_v32, 7  ;;  %1337 = vrot.lane.b32.xlu1 %v1318_v32, %s1769_s1 }
0x15e8   :  { %v194_v2 = vpop.permute.xlu0 %193 }
0x15e9   :  { %200 = vst.msk [vmem:[%s2215_s4] sm:$0x1] %vm199_vm4, %v194_v2  ;;  %v1322_v56 = vsel %vm178_vm3, %v1321_v20, %v1317_v18 }
0x15ea   :  { %v196_v7 = vpop.permute.xlu1 %195  ;;  %1323 = vrot.lane.b32.xlu0 %v1322_v56, %s1769_s1 }
0x15eb   :  { %201 = vst.msk [vmem:[%s2215_s4 + $0x8] sm:$0x1] %vm199_vm4, %v196_v7 }
0x15ec   :  { %v358_v58 = vpop.permute.xlu0 %357 }
0x15ed   :  { %363 = vst.msk [vmem:[%s2215_s4 + $0x1] sm:$0x1] %vm199_vm4, %v358_v58 }
0x15ee   :  { %v360_v42 = vpop.permute.xlu1 %359  ;;  %v1348_v19 = vld [vmem:[#allocation3] sm:$0x3]  ;;  %1009 = vrot.lane.b32.xlu0 %v2036_v44, %s1769_s1 }
0x15ef   :  { %364 = vst.msk [vmem:[%s2215_s4 + $0x9] sm:$0x1] %vm199_vm4, %v360_v42 }
0x15f0   :  { %1349 = vst.msk [vmem:[#allocation6] sm:$0x3] %vm27_vm1, %v1348_v19 }
0x15f1   :  { %1729 = shalt.err (!%p1726_p4)
}
0x15f2   :  { %s1730_s27 = scalar_lea.hbm %s2217_s6, 32 }
0x15f3   :  { %p1731_p5 = scmp.ne.s32.totalorder %s2217_s6, %s1730_s27  ;;  %p1734_p6 = scmp.lt.u32.totalorder %s1730_s27, %s2217_s6 }
0x15f5   :  { %p1736_p7 = pnand %p1734_p6, %p1731_p5 }
0x15f7   :  { %1739 = shalt.err (!%p1736_p7)
}
0x15f8   :  { %1371 = dma.vmem_to_hbm [thread:$0]  %s1369_s17, 32, %s2217_s6, [#allocation7]   ;;  %v521_v44 = vpop.permute.xlu0 %520  ;;  %v523_v21 = vpop.permute.xlu1 %522  ;;  %1172 = vrot.lane.b32.xlu0 %v2063_v33, %s1769_s1 }
0x15f9   :  { %526 = vst.msk [vmem:[%s2215_s4 + $0x2] sm:$0x1] %vm199_vm4, %v521_v44  ;;  %527 = vst.msk [vmem:[%s2215_s4 + $0xa] sm:$0x1] %vm199_vm4, %v523_v21  ;;  %s1773_s23 = smov [#allocation4]  }
0x15fa   :  { %s1358_s24 = sshll.u32 %s1773_s23, 4  ;;  %s1359_s24 = int_to_ptr.vmem [resolvable:$true] %s1358_s24 }
0x15fb   :  { %s1740_s29 = scalar_lea.vmem %s1359_s24, 32  ;;  %p1745_p9 = scmp.lt.s32.totalorder %s1359_s24, %s1359_s24 }
0x15fc   :  { %v684_v22 = vpop.permute.xlu0 %683  ;;  %v686_v23 = vpop.permute.xlu1 %685  ;;  %1335 = vrot.lane.b32.xlu0 %v1317_v18, %s1769_s1  ;;  %p1741_p8 = scmp.ne.s32.totalorder %s1359_s24, %s1740_s29  ;;  %p1746_p10 = scmp.lt.s32.totalorder %s1740_s29, %s1740_s29 }
0x15fd   :  { %689 = vst.msk [vmem:[%s2215_s4 + $0x3] sm:$0x1] %vm199_vm4, %v684_v22  ;;  %690 = vst.msk [vmem:[%s2215_s4 + $0xb] sm:$0x1] %vm199_vm4, %v686_v23 }
0x15fe   :  { %p1747_p11 = por %p1746_p10, %p1745_p9 }
0x1600   :  { %v847_v24 = vpop.permute.xlu0 %846  ;;  %v849_v25 = vpop.permute.xlu1 %848  ;;  %p1748_p12 = pnand %p1747_p11, %p1741_p8 }
0x1601   :  { %852 = vst.msk [vmem:[%s2215_s4 + $0x4] sm:$0x1] %vm199_vm4, %v847_v24  ;;  %853 = vst.msk [vmem:[%s2215_s4 + $0xc] sm:$0x1] %vm199_vm4, %v849_v25 }
0x1604   :  { %v1012_v26 = vpop.permute.xlu1 %1011 }
0x1605   :  { %1016 = vst.msk [vmem:[%s2215_s4 + $0xd] sm:$0x1] %vm199_vm4, %v1012_v26 }
0x1608   :  { %v1175_v27 = vpop.permute.xlu1 %1174 }
0x1609   :  { %1179 = vst.msk [vmem:[%s2215_s4 + $0xe] sm:$0x1] %vm199_vm4, %v1175_v27 }
0x1659   :  { %v1338_v28 = vpop.permute.xlu1 %1337 }
0x165a   :  { %1342 = vst.msk [vmem:[%s2215_s4 + $0xf] sm:$0x1] %vm199_vm4, %v1338_v28 }
0x165c   :  { %v1324_v29 = vpop.permute.xlu0 %1323 }
0x165d   :  { %1326 = vst.msk [vmem:[#allocation2] sm:$0x3] %vm27_vm1, %v1324_v29 }
0x1660   :  { %v1010_v30 = vpop.permute.xlu0 %1009 }
0x1661   :  { %1015 = vst.msk [vmem:[%s2215_s4 + $0x5] sm:$0x1] %vm199_vm4, %v1010_v30 }
0x1664   :  { %v1346_v33 = vld [vmem:[#allocation2] sm:$0x3] }
0x1665   :  { %1347 = vst.msk [vmem:[#allocation4] sm:$0x3] %vm27_vm1, %v1346_v33 }
0x166a   :  { %v1173_v31 = vpop.permute.xlu0 %1172 }
0x166b   :  { %1178 = vst.msk [vmem:[%s2215_s4 + $0x6] sm:$0x1] %vm199_vm4, %v1173_v31 }
0x166c   :  { %1751 = shalt.err (!%p1748_p12)
}
0x166d   :  { %s1752_s8 = scalar_lea.hbm %s2216_s5, 32 }
0x166e   :  { %p1753_p13 = scmp.ne.s32.totalorder %s2216_s5, %s1752_s8  ;;  %p1756_p0 = scmp.lt.u32.totalorder %s1752_s8, %s2216_s5 }
0x1670   :  { %p1758_p1 = pnand %p1756_p0, %p1753_p13 }
0x1672   :  { %1761 = shalt.err (!%p1758_p1)
}
0x1673   :  { %1361 = dma.vmem_to_hbm [thread:$0]  %s1359_s24, 32, %s2216_s5, [#allocation5]   ;;  %v1336_v35 = vpop.permute.xlu0 %1335 }
0x1674   :  { %1341 = vst.msk [vmem:[%s2215_s4 + $0x7] sm:$0x1] %vm199_vm4, %v1336_v35 }
0x1675   :  { %1762 = dma.done.wait [#allocation5], 32  }
0x1676   :  { %1763 = vsyncadd [#allocation5], 4294967264 }
0x1677   :  { %1764 = dma.done.wait [#allocation7], 32  }
0x1678   :  { %1765 = vsyncadd [#allocation7], 4294967264 }
0x1679   :  { %1380 = vsyncpa [#allocation5], 1 }
0x167a   :  { %1381 = vsyncpa [#allocation7], 1 }

</bundles_post_ra>
